<compile_context>
chip_gen: v6e
topology: v6e:2x2x1
jax: 0.10.0
libtpu: 0.0.40
codegen_flags: <defaults>
</compile_context>

<pallas_src>
import functools

import jax
import jax.numpy as jnp
import numpy as np
from jax.experimental import pallas as pl
from jax.experimental.pallas import tpu as pltpu

EPS = 1e-5  # PyTorch GroupNorm default


def _bottleneck_csp_kernel(n_bottle, H, W, shortcut,
                           x_ref, w_cv1_ref, g_cv1_ref, b_cv1_ref,
                           w_cv2_ref, g_cv2_ref, b_cv2_ref, *rest):
    # rest = [wb1, gb1, bb1, wb2 (9, O, I), gb2, bb2] * n_bottle
    #        + [w3a, w3b, g3, b3, out_ref]
    bott_refs = rest[:6 * n_bottle]
    w3a_ref, w3b_ref, g3_ref, b3_ref, out_ref = rest[6 * n_bottle:]

    HW = H * W
    f32 = jnp.float32
    bf16 = jnp.bfloat16

    def gn_relu(z, g_ref, b_ref):
        # GroupNorm(1, C) over the whole (C, H*W) sample, in f32, with the
        # affine folded into the normalization scalars.
        mean = jnp.mean(z)
        var = jnp.mean(jnp.square(z - mean))            # two-pass (stable)
        scale = g_ref[...] * jax.lax.rsqrt(var + EPS)   # (C, 1)
        bias = b_ref[...] - mean * scale                # (C, 1)
        return jnp.maximum(z * scale + bias, 0.0)

    # Edge-wrap masks for the 3x3 taps: built once, reused by every tap of
    # every bottleneck (hoisted out of the tap loops).
    pos = jax.lax.broadcasted_iota(jnp.int32, (1, HW), 1)
    col = pos % W
    col_ok = {0: col >= 1, 1: None, 2: col <= W - 2}        # keyed by dx
    row_ok = {0: pos >= W, 1: None, 2: pos < (H - 1) * W}   # keyed by dy
    tap_mask = {}
    for dy in range(3):
        for dx in range(3):
            m = row_ok[dy]
            if col_ok[dx] is not None:
                m = col_ok[dx] if m is None else (m & col_ok[dx])
            tap_mask[(dy, dx)] = m

    x = x_ref[0]                                     # (C1, H*W), bf16

    # ---- cv1 branch: 1x1 conv (bf16 MXU, f32 accum) + GN + ReLU -------------
    a = gn_relu(jnp.dot(w_cv1_ref[...], x, preferred_element_type=f32),
                g_cv1_ref, b_cv1_ref)                # (c_, H*W) f32

    # ---- m: sequence of Bottleneck blocks ------------------------------------
    for bi in range(n_bottle):
        wb1, gb1, bb1, wb2, gb2, bb2 = bott_refs[6 * bi:6 * bi + 6]

        # Bottleneck.cv1: 1x1 conv + GN + ReLU
        t = gn_relu(jnp.dot(wb1[...], a.astype(bf16),
                            preferred_element_type=f32),
                    gb1, bb1)                        # (c_, H*W) f32

        # Bottleneck.cv2: 3x3 conv (pad 1) as 9 rolled taps x MXU matmuls.
        # tap(dy, dx)[i] = t[i + (dy-1)*W + (dx-1)], masked where the source
        # pixel falls outside the image.  pltpu.roll keeps the shift on the
        # XLU; no padded VMEM scratch, no unaligned slices.
        acc = None
        for dy in range(3):
            for dx in range(3):
                off = (dy - 1) * W + (dx - 1)        # static flat offset
                tap = t if off == 0 else pltpu.roll(t, (-off) % HW, 1)
                m = tap_mask[(dy, dx)]
                if m is not None:
                    tap = jnp.where(m, tap, 0.0)
                part = jnp.dot(wb2[dy * 3 + dx], tap.astype(bf16),
                               preferred_element_type=f32)
                acc = part if acc is None else acc + part   # first tap inits
        u = gn_relu(acc, gb2, bb2)

        a = a + u if shortcut else u                 # residual add (c1 == c2)

    # ---- cv2 branch: 1x1 conv + GN + ReLU -------------------------------------
    c = gn_relu(jnp.dot(w_cv2_ref[...], x, preferred_element_type=f32),
                g_cv2_ref, b_cv2_ref)                # (c_, H*W) f32

    # ---- cv3 on concat([a, c]) -- split matmuls (no in-kernel concat) ---------
    z = (jnp.dot(w3a_ref[...], a.astype(bf16), preferred_element_type=f32)
         + jnp.dot(w3b_ref[...], c.astype(bf16), preferred_element_type=f32))
    out_ref[0] = gn_relu(z, g3_ref, b3_ref)


def bottleneck_csp_pallas(x, csp_params, bottleneck_params, shortcut=True):
    """x: (N, C1, H, W). csp_params = (w_cv1, g_cv1, b_cv1, w_cv2, g_cv2, b_cv2,
    w_cv3, g_cv3, b_cv3). bottleneck_params = list of (wb1, gb1, bb1,
    wb2 (c_,c_,3,3), gb2, bb2)."""
    (w_cv1, g_cv1, b_cv1, w_cv2, g_cv2, b_cv2, w_cv3, g_cv3, b_cv3) = csp_params
    N, C1, H, W = x.shape
    c_ = w_cv1.shape[0]
    c2 = w_cv3.shape[0]
    HW = H * W
    nb = len(bottleneck_params)

    bf = lambda a: a.astype(jnp.bfloat16)                    # MXU operands
    colv = lambda v: v.reshape(-1, 1).astype(jnp.float32)    # GN affine (C,1)

    # Lane-dense layout: (C, H*W) so the last (lane) dim is a multiple of 128.
    xf = bf(x.reshape(N, C1, HW))
    args = [xf,
            bf(w_cv1), colv(g_cv1), colv(b_cv1),
            bf(w_cv2), colv(g_cv2), colv(b_cv2)]
    for (wb1, gb1, bb1, wb2, gb2, bb2) in bottleneck_params:
        # (O, I, 3, 3) -> (9, O, I), tap index = dy*3 + dx
        wb2_k = jnp.transpose(wb2, (2, 3, 0, 1)).reshape(9, wb2.shape[0],
                                                         wb2.shape[1])
        args += [bf(wb1), colv(gb1), colv(bb1), bf(wb2_k), colv(gb2), colv(bb2)]
    # cv3 weight split into the two concat halves: [m(cv1(x)) | cv2(x)]
    args += [bf(w_cv3[:, :c_]), bf(w_cv3[:, c_:]), colv(g_cv3), colv(b_cv3)]

    def const_spec(a):
        nd = a.ndim
        return pl.BlockSpec(a.shape, lambda n, _nd=nd: (0,) * _nd)

    in_specs = ([pl.BlockSpec((1, C1, HW), lambda n: (n, 0, 0))]
                + [const_spec(a) for a in args[1:]])

    kernel = functools.partial(_bottleneck_csp_kernel, nb, H, W, shortcut)

    out = pl.pallas_call(
        kernel,
        out_shape=jax.ShapeDtypeStruct((N, c2, HW), jnp.float32),
        grid=(N,),
        in_specs=in_specs,
        out_specs=pl.BlockSpec((1, c2, HW), lambda n: (n, 0, 0)),
        compiler_params=pltpu.CompilerParams(
            dimension_semantics=("parallel",),
            vmem_limit_bytes=48 * 1024 * 1024),
    )(*args)
    return out.reshape(N, c2, H, W)


# ------------------------------ pure-JAX reference ---------------------------
def _gn_relu_ref(y, g, b):
    mean = jnp.mean(y, axis=(1, 2, 3), keepdims=True)
    var = jnp.mean(jnp.square(y - mean), axis=(1, 2, 3), keepdims=True)
    yn = (y - mean) * jax.lax.rsqrt(var + EPS)
    return jax.nn.relu(yn * g[None, :, None, None] + b[None, :, None, None])


def bottleneck_csp_reference(x, csp_params, bottleneck_params, shortcut=True,
                             operand_cast=lambda v: v):
    """Module forward.  `operand_cast` is applied to every conv operand so the
    reference can mirror the kernel's bf16 MXU inputs (accumulation / GN stay
    in f32 either way)."""
    q = operand_cast
    conv1 = lambda xx, w: jnp.einsum("oc,nchw->nohw", q(w), q(xx),
                                     precision=jax.lax.Precision.HIGHEST)
    conv3 = lambda xx, w: jax.lax.conv_general_dilated(
        q(xx), q(w), window_strides=(1, 1), padding=((1, 1), (1, 1)),
        dimension_numbers=("NCHW", "OIHW", "NCHW"),
        precision=jax.lax.Precision.HIGHEST)

    (w1, g1, b1, w2, g2, b2, w3, g3, b3) = csp_params
    a = _gn_relu_ref(conv1(x, w1), g1, b1)
    for (wb1, gb1, bb1, wb2, gb2, bb2) in bottleneck_params:
        t = _gn_relu_ref(conv1(a, wb1), gb1, bb1)
        u = _gn_relu_ref(conv3(t, wb2), gb2, bb2)
        a = a + u if shortcut else u
    c = _gn_relu_ref(conv1(x, w2), g2, b2)
    cat = jnp.concatenate([a, c], axis=1)
    return _gn_relu_ref(conv1(cat, w3), g3, b3)


if __name__ == "__main__":
    key = jax.random.PRNGKey(0)
    N, c1, H, W = 2, 4, 16, 16
    c2, n_bottle, e = 4, 1, 0.5          # module defaults: n=1, shortcut, g=1
    c_ = int(c2 * e)

    ks = list(jax.random.split(key, 16))
    rn = lambda k, s, sc=0.5: sc * jax.random.normal(k, s, jnp.float32)

    x = jax.random.normal(ks[0], (N, c1, H, W), jnp.float32)
    csp_params = (
        rn(ks[1], (c_, c1)), 1.0 + rn(ks[2], (c_,), 0.1), rn(ks[3], (c_,), 0.1),
        rn(ks[4], (c_, c1)), 1.0 + rn(ks[5], (c_,), 0.1), rn(ks[6], (c_,), 0.1),
        rn(ks[7], (c2, 2 * c_)), 1.0 + rn(ks[8], (c2,), 0.1), rn(ks[9], (c2,), 0.1),
    )
    bottleneck_params = [(
        rn(ks[10], (c_, c_)), 1.0 + rn(ks[11], (c_,), 0.1), rn(ks[12], (c_,), 0.1),
        rn(ks[13], (c_, c_, 3, 3)), 1.0 + rn(ks[14], (c_,), 0.1),
        rn(ks[15], (c_,), 0.1),
    )]
    # TODO(synk): grouped 3x3 conv (g > 1) not implemented; module default g=1.

    out = bottleneck_csp_pallas(x, csp_params, bottleneck_params, shortcut=True)
    out = jax.block_until_ready(out)

    # Reference mirrors the kernel's bf16 MXU operands (f32 accumulation and
    # f32 GroupNorm), so the check is tight.  Vs. a pure-f32 reference the
    # difference is O(bf16 eps) per layer, as expected for bf16 matmul inputs.
    q = lambda v: v.astype(jnp.bfloat16).astype(jnp.float32)
    ref = bottleneck_csp_reference(x, csp_params, bottleneck_params,
                                   shortcut=True, operand_cast=q)
    np.testing.assert_allclose(np.asarray(out), np.asarray(ref),
                               rtol=2e-3, atol=2e-3)
    print("KERNEL_OK")
</pallas_src>

<mosaic_0001>
module attributes {stable_mosaic.version = 11 : i64} {
  func.func @_bottleneck_csp_kernel(%arg0: i32, %arg1: memref<1x4x256xbf16, #tpu.memory_space<vmem>>, %arg2: memref<2x4xbf16, #tpu.memory_space<vmem>>, %arg3: memref<2x1xf32, #tpu.memory_space<vmem>>, %arg4: memref<2x1xf32, #tpu.memory_space<vmem>>, %arg5: memref<2x4xbf16, #tpu.memory_space<vmem>>, %arg6: memref<2x1xf32, #tpu.memory_space<vmem>>, %arg7: memref<2x1xf32, #tpu.memory_space<vmem>>, %arg8: memref<2x2xbf16, #tpu.memory_space<vmem>>, %arg9: memref<2x1xf32, #tpu.memory_space<vmem>>, %arg10: memref<2x1xf32, #tpu.memory_space<vmem>>, %arg11: memref<9x2x2xbf16, #tpu.memory_space<vmem>>, %arg12: memref<2x1xf32, #tpu.memory_space<vmem>>, %arg13: memref<2x1xf32, #tpu.memory_space<vmem>>, %arg14: memref<4x2xbf16, #tpu.memory_space<vmem>>, %arg15: memref<4x2xbf16, #tpu.memory_space<vmem>>, %arg16: memref<4x1xf32, #tpu.memory_space<vmem>>, %arg17: memref<4x1xf32, #tpu.memory_space<vmem>>, %arg18: memref<1x4x256xf32, #tpu.memory_space<vmem>>) attributes {dimension_semantics = [#tpu.dimension_semantics<parallel>], iteration_bounds = array<i64: 2>, scalar_prefetch = 0 : i64, scratch_operands = 0 : i64, tpu.core_type = #tpu.core_type<tc>, window_params = [{transform_indices = @transform_0, window_bounds = array<i64: 1, 4, 256>}, {pipeline_mode = #tpu.pipeline_mode<synchronous>, transform_indices = @transform_1, window_bounds = array<i64: 2, 4>}, {pipeline_mode = #tpu.pipeline_mode<synchronous>, transform_indices = @transform_2, window_bounds = array<i64: 2, 1>}, {pipeline_mode = #tpu.pipeline_mode<synchronous>, transform_indices = @transform_3, window_bounds = array<i64: 2, 1>}, {pipeline_mode = #tpu.pipeline_mode<synchronous>, transform_indices = @transform_4, window_bounds = array<i64: 2, 4>}, {pipeline_mode = #tpu.pipeline_mode<synchronous>, transform_indices = @transform_5, window_bounds = array<i64: 2, 1>}, {pipeline_mode = #tpu.pipeline_mode<synchronous>, transform_indices = @transform_6, window_bounds = array<i64: 2, 1>}, {pipeline_mode = #tpu.pipeline_mode<synchronous>, transform_indices = @transform_7, window_bounds = array<i64: 2, 2>}, {pipeline_mode = #tpu.pipeline_mode<synchronous>, transform_indices = @transform_8, window_bounds = array<i64: 2, 1>}, {pipeline_mode = #tpu.pipeline_mode<synchronous>, transform_indices = @transform_9, window_bounds = array<i64: 2, 1>}, {pipeline_mode = #tpu.pipeline_mode<synchronous>, transform_indices = @transform_10, window_bounds = array<i64: 9, 2, 2>}, {pipeline_mode = #tpu.pipeline_mode<synchronous>, transform_indices = @transform_11, window_bounds = array<i64: 2, 1>}, {pipeline_mode = #tpu.pipeline_mode<synchronous>, transform_indices = @transform_12, window_bounds = array<i64: 2, 1>}, {pipeline_mode = #tpu.pipeline_mode<synchronous>, transform_indices = @transform_13, window_bounds = array<i64: 4, 2>}, {pipeline_mode = #tpu.pipeline_mode<synchronous>, transform_indices = @transform_14, window_bounds = array<i64: 4, 2>}, {pipeline_mode = #tpu.pipeline_mode<synchronous>, transform_indices = @transform_15, window_bounds = array<i64: 4, 1>}, {pipeline_mode = #tpu.pipeline_mode<synchronous>, transform_indices = @transform_16, window_bounds = array<i64: 4, 1>}, {transform_indices = @transform_17, window_bounds = array<i64: 1, 4, 256>}]} {
    %0 = tpu.iota {dimensions = array<i32: 1>} : vector<1x256xi32>
    %c16_i32 = arith.constant 16 : i32
    %c0_i32 = arith.constant 0 : i32
    %1 = arith.cmpi eq, %c16_i32, %c0_i32 : i32
    %c1_i32 = arith.constant 1 : i32
    %2 = arith.select %1, %c1_i32, %c16_i32 : i32
    %3 = vector.broadcast %2 : i32 to vector<1x256xi32>
    %4 = arith.remsi %0, %3 : vector<1x256xi32>
    %c0_i32_0 = arith.constant 0 : i32
    %5 = vector.broadcast %c0_i32_0 : i32 to vector<1x256xi32>
    %6 = arith.cmpi ne, %4, %5 : vector<1x256xi32>
    %c0_i32_1 = arith.constant 0 : i32
    %7 = vector.broadcast %c0_i32_1 : i32 to vector<1x256xi32>
    %8 = arith.cmpi slt, %4, %7 : vector<1x256xi32>
    %c0_i32_2 = arith.constant 0 : i32
    %9 = arith.cmpi slt, %2, %c0_i32_2 : i32
    %10 = vector.broadcast %9 : i1 to vector<1x256xi1>
    %11 = vector.broadcast %10 : vector<1x256xi1> to vector<1x256xi1>
    %12 = arith.xori %8, %11 : vector<1x256xi1>
    %13 = arith.andi %12, %6 : vector<1x256xi1>
    %14 = vector.broadcast %2 : i32 to vector<1x256xi32>
    %15 = arith.addi %4, %14 : vector<1x256xi32>
    %16 = arith.select %13, %15, %4 : vector<1x256xi1>, vector<1x256xi32>
    %c1_i32_3 = arith.constant 1 : i32
    %17 = vector.broadcast %c1_i32_3 : i32 to vector<1x256xi32>
    %18 = arith.cmpi sge, %16, %17 : vector<1x256xi32>
    %c14_i32 = arith.constant 14 : i32
    %19 = vector.broadcast %c14_i32 : i32 to vector<1x256xi32>
    %20 = arith.cmpi sle, %16, %19 : vector<1x256xi32>
    %c16_i32_4 = arith.constant 16 : i32
    %21 = vector.broadcast %c16_i32_4 : i32 to vector<1x256xi32>
    %22 = arith.cmpi sge, %0, %21 : vector<1x256xi32>
    %c240_i32 = arith.constant 240 : i32
    %23 = vector.broadcast %c240_i32 : i32 to vector<1x256xi32>
    %24 = arith.cmpi slt, %0, %23 : vector<1x256xi32>
    %25 = arith.andi %22, %18 : vector<1x256xi1>
    %26 = arith.andi %22, %20 : vector<1x256xi1>
    %27 = arith.andi %24, %18 : vector<1x256xi1>
    %28 = arith.andi %24, %20 : vector<1x256xi1>
    %c0 = arith.constant 0 : index
    %c0_5 = arith.constant 0 : index
    %c0_6 = arith.constant 0 : index
    %29 = vector.load %arg1[%c0, %c0_5, %c0_6] : memref<1x4x256xbf16, #tpu.memory_space<vmem>>, vector<1x4x256xbf16>
    %30 = vector.shape_cast %29 : vector<1x4x256xbf16> to vector<4x256xbf16>
    %c0_7 = arith.constant 0 : index
    %c0_8 = arith.constant 0 : index
    %31 = vector.load %arg2[%c0_7, %c0_8] : memref<2x4xbf16, #tpu.memory_space<vmem>>, vector<2x4xbf16>
    %cst = arith.constant dense<0.000000e+00> : vector<2x256xf32>
    %32 = tpu.matmul %31, %30, %cst {dimension_numbers = #tpu.dot_dimension_numbers<[1], [0], [0], [1], [0, 0, 1, 1], [], []>} : vector<2x4xbf16>, vector<4x256xbf16>, vector<2x256xf32> -> vector<2x256xf32>
    %33 = vector.shape_cast %32 : vector<2x256xf32> to vector<1x2x256xf32>
    %cst_9 = arith.constant dense<0.000000e+00> : vector<1xf32>
    %34 = vector.multi_reduction <add>, %33, %cst_9 [1, 2] : vector<1x2x256xf32> to vector<1xf32>
    %35 = vector.shape_cast %34 : vector<1xf32> to vector<1x1x1xf32>
    %36 = vector.extract %35[0, 0, 0] : f32 from vector<1x1x1xf32>
    %cst_10 = arith.constant 5.120000e+02 : f32
    %37 = arith.divf %36, %cst_10 : f32
    %38 = vector.broadcast %37 : f32 to vector<2x256xf32>
    %39 = arith.subf %32, %38 : vector<2x256xf32>
    %40 = arith.mulf %39, %39 : vector<2x256xf32>
    %41 = vector.shape_cast %40 : vector<2x256xf32> to vector<1x2x256xf32>
    %cst_11 = arith.constant dense<0.000000e+00> : vector<1xf32>
    %42 = vector.multi_reduction <add>, %41, %cst_11 [1, 2] : vector<1x2x256xf32> to vector<1xf32>
    %43 = vector.shape_cast %42 : vector<1xf32> to vector<1x1x1xf32>
    %44 = vector.extract %43[0, 0, 0] : f32 from vector<1x1x1xf32>
    %cst_12 = arith.constant 5.120000e+02 : f32
    %45 = arith.divf %44, %cst_12 : f32
    %c0_13 = arith.constant 0 : index
    %c0_14 = arith.constant 0 : index
    %46 = vector.load %arg3[%c0_13, %c0_14] : memref<2x1xf32, #tpu.memory_space<vmem>>, vector<2x1xf32>
    %cst_15 = arith.constant 9.99999974E-6 : f32
    %47 = arith.addf %45, %cst_15 : f32
    %48 = math.rsqrt %47 : f32
    %49 = vector.broadcast %48 : f32 to vector<2x1xf32>
    %50 = arith.mulf %46, %49 : vector<2x1xf32>
    %c0_16 = arith.constant 0 : index
    %c0_17 = arith.constant 0 : index
    %51 = vector.load %arg4[%c0_16, %c0_17] : memref<2x1xf32, #tpu.memory_space<vmem>>, vector<2x1xf32>
    %52 = vector.broadcast %37 : f32 to vector<2x1xf32>
    %53 = arith.mulf %52, %50 : vector<2x1xf32>
    %54 = arith.subf %51, %53 : vector<2x1xf32>
    %55 = vector.broadcast %50 : vector<2x1xf32> to vector<2x256xf32>
    %56 = arith.mulf %32, %55 : vector<2x256xf32>
    %57 = vector.broadcast %54 : vector<2x1xf32> to vector<2x256xf32>
    %58 = arith.addf %56, %57 : vector<2x256xf32>
    %cst_18 = arith.constant 0.000000e+00 : f32
    %59 = vector.broadcast %cst_18 : f32 to vector<2x256xf32>
    %60 = arith.maximumf %58, %59 : vector<2x256xf32>
    %c0_19 = arith.constant 0 : index
    %c0_20 = arith.constant 0 : index
    %61 = vector.load %arg8[%c0_19, %c0_20] : memref<2x2xbf16, #tpu.memory_space<vmem>>, vector<2x2xbf16>
    %62 = arith.truncf %60 : vector<2x256xf32> to vector<2x256xbf16>
    %cst_21 = arith.constant dense<0.000000e+00> : vector<2x256xf32>
    %63 = tpu.matmul %61, %62, %cst_21 {dimension_numbers = #tpu.dot_dimension_numbers<[1], [0], [0], [1], [0, 0, 1, 1], [], []>} : vector<2x2xbf16>, vector<2x256xbf16>, vector<2x256xf32> -> vector<2x256xf32>
    %64 = vector.shape_cast %63 : vector<2x256xf32> to vector<1x2x256xf32>
    %cst_22 = arith.constant dense<0.000000e+00> : vector<1xf32>
    %65 = vector.multi_reduction <add>, %64, %cst_22 [1, 2] : vector<1x2x256xf32> to vector<1xf32>
    %66 = vector.shape_cast %65 : vector<1xf32> to vector<1x1x1xf32>
    %67 = vector.extract %66[0, 0, 0] : f32 from vector<1x1x1xf32>
    %cst_23 = arith.constant 5.120000e+02 : f32
    %68 = arith.divf %67, %cst_23 : f32
    %69 = vector.broadcast %68 : f32 to vector<2x256xf32>
    %70 = arith.subf %63, %69 : vector<2x256xf32>
    %71 = arith.mulf %70, %70 : vector<2x256xf32>
    %72 = vector.shape_cast %71 : vector<2x256xf32> to vector<1x2x256xf32>
    %cst_24 = arith.constant dense<0.000000e+00> : vector<1xf32>
    %73 = vector.multi_reduction <add>, %72, %cst_24 [1, 2] : vector<1x2x256xf32> to vector<1xf32>
    %74 = vector.shape_cast %73 : vector<1xf32> to vector<1x1x1xf32>
    %75 = vector.extract %74[0, 0, 0] : f32 from vector<1x1x1xf32>
    %cst_25 = arith.constant 5.120000e+02 : f32
    %76 = arith.divf %75, %cst_25 : f32
    %c0_26 = arith.constant 0 : index
    %c0_27 = arith.constant 0 : index
    %77 = vector.load %arg9[%c0_26, %c0_27] : memref<2x1xf32, #tpu.memory_space<vmem>>, vector<2x1xf32>
    %cst_28 = arith.constant 9.99999974E-6 : f32
    %78 = arith.addf %76, %cst_28 : f32
    %79 = math.rsqrt %78 : f32
    %80 = vector.broadcast %79 : f32 to vector<2x1xf32>
    %81 = arith.mulf %77, %80 : vector<2x1xf32>
    %c0_29 = arith.constant 0 : index
    %c0_30 = arith.constant 0 : index
    %82 = vector.load %arg10[%c0_29, %c0_30] : memref<2x1xf32, #tpu.memory_space<vmem>>, vector<2x1xf32>
    %83 = vector.broadcast %68 : f32 to vector<2x1xf32>
    %84 = arith.mulf %83, %81 : vector<2x1xf32>
    %85 = arith.subf %82, %84 : vector<2x1xf32>
    %86 = vector.broadcast %81 : vector<2x1xf32> to vector<2x256xf32>
    %87 = arith.mulf %63, %86 : vector<2x256xf32>
    %88 = vector.broadcast %85 : vector<2x1xf32> to vector<2x256xf32>
    %89 = arith.addf %87, %88 : vector<2x256xf32>
    %cst_31 = arith.constant 0.000000e+00 : f32
    %90 = vector.broadcast %cst_31 : f32 to vector<2x256xf32>
    %91 = arith.maximumf %89, %90 : vector<2x256xf32>
    %c17_i32 = arith.constant 17 : i32
    %92 = tpu.dynamic_rotate %91 by %c17_i32 dim 1 : vector<2x256xf32>, i32 -> vector<2x256xf32>
    %cst_32 = arith.constant 0.000000e+00 : f32
    %93 = vector.shape_cast %25 : vector<1x256xi1> to vector<1x256xi1>
    %94 = vector.broadcast %93 : vector<1x256xi1> to vector<2x256xi1>
    %95 = vector.broadcast %cst_32 : f32 to vector<2x256xf32>
    %96 = arith.select %94, %92, %95 : vector<2x256xi1>, vector<2x256xf32>
    %c0_33 = arith.constant 0 : index
    %c0_34 = arith.constant 0 : index
    %c0_35 = arith.constant 0 : index
    %97 = vector.load %arg11[%c0_33, %c0_34, %c0_35] : memref<9x2x2xbf16, #tpu.memory_space<vmem>>, vector<1x2x2xbf16>
    %98 = vector.shape_cast %97 : vector<1x2x2xbf16> to vector<2x2xbf16>
    %99 = arith.truncf %96 : vector<2x256xf32> to vector<2x256xbf16>
    %cst_36 = arith.constant dense<0.000000e+00> : vector<2x256xf32>
    %100 = tpu.matmul %98, %99, %cst_36 {dimension_numbers = #tpu.dot_dimension_numbers<[1], [0], [0], [1], [0, 0, 1, 1], [], []>} : vector<2x2xbf16>, vector<2x256xbf16>, vector<2x256xf32> -> vector<2x256xf32>
    %c16_i32_37 = arith.constant 16 : i32
    %101 = tpu.dynamic_rotate %91 by %c16_i32_37 dim 1 : vector<2x256xf32>, i32 -> vector<2x256xf32>
    %cst_38 = arith.constant 0.000000e+00 : f32
    %102 = vector.shape_cast %22 : vector<1x256xi1> to vector<1x256xi1>
    %103 = vector.broadcast %102 : vector<1x256xi1> to vector<2x256xi1>
    %104 = vector.broadcast %cst_38 : f32 to vector<2x256xf32>
    %105 = arith.select %103, %101, %104 : vector<2x256xi1>, vector<2x256xf32>
    %c1 = arith.constant 1 : index
    %c0_39 = arith.constant 0 : index
    %c0_40 = arith.constant 0 : index
    %106 = vector.load %arg11[%c1, %c0_39, %c0_40] : memref<9x2x2xbf16, #tpu.memory_space<vmem>>, vector<1x2x2xbf16>
    %107 = vector.shape_cast %106 : vector<1x2x2xbf16> to vector<2x2xbf16>
    %108 = arith.truncf %105 : vector<2x256xf32> to vector<2x256xbf16>
    %cst_41 = arith.constant dense<0.000000e+00> : vector<2x256xf32>
    %109 = tpu.matmul %107, %108, %cst_41 {dimension_numbers = #tpu.dot_dimension_numbers<[1], [0], [0], [1], [0, 0, 1, 1], [], []>} : vector<2x2xbf16>, vector<2x256xbf16>, vector<2x256xf32> -> vector<2x256xf32>
    %110 = arith.addf %100, %109 : vector<2x256xf32>
    %c15_i32 = arith.constant 15 : i32
    %111 = tpu.dynamic_rotate %91 by %c15_i32 dim 1 : vector<2x256xf32>, i32 -> vector<2x256xf32>
    %cst_42 = arith.constant 0.000000e+00 : f32
    %112 = vector.shape_cast %26 : vector<1x256xi1> to vector<1x256xi1>
    %113 = vector.broadcast %112 : vector<1x256xi1> to vector<2x256xi1>
    %114 = vector.broadcast %cst_42 : f32 to vector<2x256xf32>
    %115 = arith.select %113, %111, %114 : vector<2x256xi1>, vector<2x256xf32>
    %c2 = arith.constant 2 : index
    %c0_43 = arith.constant 0 : index
    %c0_44 = arith.constant 0 : index
    %116 = vector.load %arg11[%c2, %c0_43, %c0_44] : memref<9x2x2xbf16, #tpu.memory_space<vmem>>, vector<1x2x2xbf16>
    %117 = vector.shape_cast %116 : vector<1x2x2xbf16> to vector<2x2xbf16>
    %118 = arith.truncf %115 : vector<2x256xf32> to vector<2x256xbf16>
    %cst_45 = arith.constant dense<0.000000e+00> : vector<2x256xf32>
    %119 = tpu.matmul %117, %118, %cst_45 {dimension_numbers = #tpu.dot_dimension_numbers<[1], [0], [0], [1], [0, 0, 1, 1], [], []>} : vector<2x2xbf16>, vector<2x256xbf16>, vector<2x256xf32> -> vector<2x256xf32>
    %120 = arith.addf %110, %119 : vector<2x256xf32>
    %c1_i32_46 = arith.constant 1 : i32
    %121 = tpu.dynamic_rotate %91 by %c1_i32_46 dim 1 : vector<2x256xf32>, i32 -> vector<2x256xf32>
    %cst_47 = arith.constant 0.000000e+00 : f32
    %122 = vector.shape_cast %18 : vector<1x256xi1> to vector<1x256xi1>
    %123 = vector.broadcast %122 : vector<1x256xi1> to vector<2x256xi1>
    %124 = vector.broadcast %cst_47 : f32 to vector<2x256xf32>
    %125 = arith.select %123, %121, %124 : vector<2x256xi1>, vector<2x256xf32>
    %c3 = arith.constant 3 : index
    %c0_48 = arith.constant 0 : index
    %c0_49 = arith.constant 0 : index
    %126 = vector.load %arg11[%c3, %c0_48, %c0_49] : memref<9x2x2xbf16, #tpu.memory_space<vmem>>, vector<1x2x2xbf16>
    %127 = vector.shape_cast %126 : vector<1x2x2xbf16> to vector<2x2xbf16>
    %128 = arith.truncf %125 : vector<2x256xf32> to vector<2x256xbf16>
    %cst_50 = arith.constant dense<0.000000e+00> : vector<2x256xf32>
    %129 = tpu.matmul %127, %128, %cst_50 {dimension_numbers = #tpu.dot_dimension_numbers<[1], [0], [0], [1], [0, 0, 1, 1], [], []>} : vector<2x2xbf16>, vector<2x256xbf16>, vector<2x256xf32> -> vector<2x256xf32>
    %130 = arith.addf %120, %129 : vector<2x256xf32>
    %c4 = arith.constant 4 : index
    %c0_51 = arith.constant 0 : index
    %c0_52 = arith.constant 0 : index
    %131 = vector.load %arg11[%c4, %c0_51, %c0_52] : memref<9x2x2xbf16, #tpu.memory_space<vmem>>, vector<1x2x2xbf16>
    %132 = vector.shape_cast %131 : vector<1x2x2xbf16> to vector<2x2xbf16>
    %133 = arith.truncf %91 : vector<2x256xf32> to vector<2x256xbf16>
    %cst_53 = arith.constant dense<0.000000e+00> : vector<2x256xf32>
    %134 = tpu.matmul %132, %133, %cst_53 {dimension_numbers = #tpu.dot_dimension_numbers<[1], [0], [0], [1], [0, 0, 1, 1], [], []>} : vector<2x2xbf16>, vector<2x256xbf16>, vector<2x256xf32> -> vector<2x256xf32>
    %135 = arith.addf %130, %134 : vector<2x256xf32>
    %c255_i32 = arith.constant 255 : i32
    %136 = tpu.dynamic_rotate %91 by %c255_i32 dim 1 : vector<2x256xf32>, i32 -> vector<2x256xf32>
    %cst_54 = arith.constant 0.000000e+00 : f32
    %137 = vector.shape_cast %20 : vector<1x256xi1> to vector<1x256xi1>
    %138 = vector.broadcast %137 : vector<1x256xi1> to vector<2x256xi1>
    %139 = vector.broadcast %cst_54 : f32 to vector<2x256xf32>
    %140 = arith.select %138, %136, %139 : vector<2x256xi1>, vector<2x256xf32>
    %c5 = arith.constant 5 : index
    %c0_55 = arith.constant 0 : index
    %c0_56 = arith.constant 0 : index
    %141 = vector.load %arg11[%c5, %c0_55, %c0_56] : memref<9x2x2xbf16, #tpu.memory_space<vmem>>, vector<1x2x2xbf16>
    %142 = vector.shape_cast %141 : vector<1x2x2xbf16> to vector<2x2xbf16>
    %143 = arith.truncf %140 : vector<2x256xf32> to vector<2x256xbf16>
    %cst_57 = arith.constant dense<0.000000e+00> : vector<2x256xf32>
    %144 = tpu.matmul %142, %143, %cst_57 {dimension_numbers = #tpu.dot_dimension_numbers<[1], [0], [0], [1], [0, 0, 1, 1], [], []>} : vector<2x2xbf16>, vector<2x256xbf16>, vector<2x256xf32> -> vector<2x256xf32>
    %145 = arith.addf %135, %144 : vector<2x256xf32>
    %c241_i32 = arith.constant 241 : i32
    %146 = tpu.dynamic_rotate %91 by %c241_i32 dim 1 : vector<2x256xf32>, i32 -> vector<2x256xf32>
    %cst_58 = arith.constant 0.000000e+00 : f32
    %147 = vector.shape_cast %27 : vector<1x256xi1> to vector<1x256xi1>
    %148 = vector.broadcast %147 : vector<1x256xi1> to vector<2x256xi1>
    %149 = vector.broadcast %cst_58 : f32 to vector<2x256xf32>
    %150 = arith.select %148, %146, %149 : vector<2x256xi1>, vector<2x256xf32>
    %c6 = arith.constant 6 : index
    %c0_59 = arith.constant 0 : index
    %c0_60 = arith.constant 0 : index
    %151 = vector.load %arg11[%c6, %c0_59, %c0_60] : memref<9x2x2xbf16, #tpu.memory_space<vmem>>, vector<1x2x2xbf16>
    %152 = vector.shape_cast %151 : vector<1x2x2xbf16> to vector<2x2xbf16>
    %153 = arith.truncf %150 : vector<2x256xf32> to vector<2x256xbf16>
    %cst_61 = arith.constant dense<0.000000e+00> : vector<2x256xf32>
    %154 = tpu.matmul %152, %153, %cst_61 {dimension_numbers = #tpu.dot_dimension_numbers<[1], [0], [0], [1], [0, 0, 1, 1], [], []>} : vector<2x2xbf16>, vector<2x256xbf16>, vector<2x256xf32> -> vector<2x256xf32>
    %155 = arith.addf %145, %154 : vector<2x256xf32>
    %c240_i32_62 = arith.constant 240 : i32
    %156 = tpu.dynamic_rotate %91 by %c240_i32_62 dim 1 : vector<2x256xf32>, i32 -> vector<2x256xf32>
    %cst_63 = arith.constant 0.000000e+00 : f32
    %157 = vector.shape_cast %24 : vector<1x256xi1> to vector<1x256xi1>
    %158 = vector.broadcast %157 : vector<1x256xi1> to vector<2x256xi1>
    %159 = vector.broadcast %cst_63 : f32 to vector<2x256xf32>
    %160 = arith.select %158, %156, %159 : vector<2x256xi1>, vector<2x256xf32>
    %c7 = arith.constant 7 : index
    %c0_64 = arith.constant 0 : index
    %c0_65 = arith.constant 0 : index
    %161 = vector.load %arg11[%c7, %c0_64, %c0_65] : memref<9x2x2xbf16, #tpu.memory_space<vmem>>, vector<1x2x2xbf16>
    %162 = vector.shape_cast %161 : vector<1x2x2xbf16> to vector<2x2xbf16>
    %163 = arith.truncf %160 : vector<2x256xf32> to vector<2x256xbf16>
    %cst_66 = arith.constant dense<0.000000e+00> : vector<2x256xf32>
    %164 = tpu.matmul %162, %163, %cst_66 {dimension_numbers = #tpu.dot_dimension_numbers<[1], [0], [0], [1], [0, 0, 1, 1], [], []>} : vector<2x2xbf16>, vector<2x256xbf16>, vector<2x256xf32> -> vector<2x256xf32>
    %165 = arith.addf %155, %164 : vector<2x256xf32>
    %c239_i32 = arith.constant 239 : i32
    %166 = tpu.dynamic_rotate %91 by %c239_i32 dim 1 : vector<2x256xf32>, i32 -> vector<2x256xf32>
    %cst_67 = arith.constant 0.000000e+00 : f32
    %167 = vector.shape_cast %28 : vector<1x256xi1> to vector<1x256xi1>
    %168 = vector.broadcast %167 : vector<1x256xi1> to vector<2x256xi1>
    %169 = vector.broadcast %cst_67 : f32 to vector<2x256xf32>
    %170 = arith.select %168, %166, %169 : vector<2x256xi1>, vector<2x256xf32>
    %c8 = arith.constant 8 : index
    %c0_68 = arith.constant 0 : index
    %c0_69 = arith.constant 0 : index
    %171 = vector.load %arg11[%c8, %c0_68, %c0_69] : memref<9x2x2xbf16, #tpu.memory_space<vmem>>, vector<1x2x2xbf16>
    %172 = vector.shape_cast %171 : vector<1x2x2xbf16> to vector<2x2xbf16>
    %173 = arith.truncf %170 : vector<2x256xf32> to vector<2x256xbf16>
    %cst_70 = arith.constant dense<0.000000e+00> : vector<2x256xf32>
    %174 = tpu.matmul %172, %173, %cst_70 {dimension_numbers = #tpu.dot_dimension_numbers<[1], [0], [0], [1], [0, 0, 1, 1], [], []>} : vector<2x2xbf16>, vector<2x256xbf16>, vector<2x256xf32> -> vector<2x256xf32>
    %175 = arith.addf %165, %174 : vector<2x256xf32>
    %176 = vector.shape_cast %175 : vector<2x256xf32> to vector<1x2x256xf32>
    %cst_71 = arith.constant dense<0.000000e+00> : vector<1xf32>
    %177 = vector.multi_reduction <add>, %176, %cst_71 [1, 2] : vector<1x2x256xf32> to vector<1xf32>
    %178 = vector.shape_cast %177 : vector<1xf32> to vector<1x1x1xf32>
    %179 = vector.extract %178[0, 0, 0] : f32 from vector<1x1x1xf32>
    %cst_72 = arith.constant 5.120000e+02 : f32
    %180 = arith.divf %179, %cst_72 : f32
    %181 = vector.broadcast %180 : f32 to vector<2x256xf32>
    %182 = arith.subf %175, %181 : vector<2x256xf32>
    %183 = arith.mulf %182, %182 : vector<2x256xf32>
    %184 = vector.shape_cast %183 : vector<2x256xf32> to vector<1x2x256xf32>
    %cst_73 = arith.constant dense<0.000000e+00> : vector<1xf32>
    %185 = vector.multi_reduction <add>, %184, %cst_73 [1, 2] : vector<1x2x256xf32> to vector<1xf32>
    %186 = vector.shape_cast %185 : vector<1xf32> to vector<1x1x1xf32>
    %187 = vector.extract %186[0, 0, 0] : f32 from vector<1x1x1xf32>
    %cst_74 = arith.constant 5.120000e+02 : f32
    %188 = arith.divf %187, %cst_74 : f32
    %c0_75 = arith.constant 0 : index
    %c0_76 = arith.constant 0 : index
    %189 = vector.load %arg12[%c0_75, %c0_76] : memref<2x1xf32, #tpu.memory_space<vmem>>, vector<2x1xf32>
    %cst_77 = arith.constant 9.99999974E-6 : f32
    %190 = arith.addf %188, %cst_77 : f32
    %191 = math.rsqrt %190 : f32
    %192 = vector.broadcast %191 : f32 to vector<2x1xf32>
    %193 = arith.mulf %189, %192 : vector<2x1xf32>
    %c0_78 = arith.constant 0 : index
    %c0_79 = arith.constant 0 : index
    %194 = vector.load %arg13[%c0_78, %c0_79] : memref<2x1xf32, #tpu.memory_space<vmem>>, vector<2x1xf32>
    %195 = vector.broadcast %180 : f32 to vector<2x1xf32>
    %196 = arith.mulf %195, %193 : vector<2x1xf32>
    %197 = arith.subf %194, %196 : vector<2x1xf32>
    %198 = vector.broadcast %193 : vector<2x1xf32> to vector<2x256xf32>
    %199 = arith.mulf %175, %198 : vector<2x256xf32>
    %200 = vector.broadcast %197 : vector<2x1xf32> to vector<2x256xf32>
    %201 = arith.addf %199, %200 : vector<2x256xf32>
    %cst_80 = arith.constant 0.000000e+00 : f32
    %202 = vector.broadcast %cst_80 : f32 to vector<2x256xf32>
    %203 = arith.maximumf %201, %202 : vector<2x256xf32>
    %204 = arith.addf %60, %203 : vector<2x256xf32>
    %c0_81 = arith.constant 0 : index
    %c0_82 = arith.constant 0 : index
    %205 = vector.load %arg5[%c0_81, %c0_82] : memref<2x4xbf16, #tpu.memory_space<vmem>>, vector<2x4xbf16>
    %cst_83 = arith.constant dense<0.000000e+00> : vector<2x256xf32>
    %206 = tpu.matmul %205, %30, %cst_83 {dimension_numbers = #tpu.dot_dimension_numbers<[1], [0], [0], [1], [0, 0, 1, 1], [], []>} : vector<2x4xbf16>, vector<4x256xbf16>, vector<2x256xf32> -> vector<2x256xf32>
    %207 = vector.shape_cast %206 : vector<2x256xf32> to vector<1x2x256xf32>
    %cst_84 = arith.constant dense<0.000000e+00> : vector<1xf32>
    %208 = vector.multi_reduction <add>, %207, %cst_84 [1, 2] : vector<1x2x256xf32> to vector<1xf32>
    %209 = vector.shape_cast %208 : vector<1xf32> to vector<1x1x1xf32>
    %210 = vector.extract %209[0, 0, 0] : f32 from vector<1x1x1xf32>
    %cst_85 = arith.constant 5.120000e+02 : f32
    %211 = arith.divf %210, %cst_85 : f32
    %212 = vector.broadcast %211 : f32 to vector<2x256xf32>
    %213 = arith.subf %206, %212 : vector<2x256xf32>
    %214 = arith.mulf %213, %213 : vector<2x256xf32>
    %215 = vector.shape_cast %214 : vector<2x256xf32> to vector<1x2x256xf32>
    %cst_86 = arith.constant dense<0.000000e+00> : vector<1xf32>
    %216 = vector.multi_reduction <add>, %215, %cst_86 [1, 2] : vector<1x2x256xf32> to vector<1xf32>
    %217 = vector.shape_cast %216 : vector<1xf32> to vector<1x1x1xf32>
    %218 = vector.extract %217[0, 0, 0] : f32 from vector<1x1x1xf32>
    %cst_87 = arith.constant 5.120000e+02 : f32
    %219 = arith.divf %218, %cst_87 : f32
    %c0_88 = arith.constant 0 : index
    %c0_89 = arith.constant 0 : index
    %220 = vector.load %arg6[%c0_88, %c0_89] : memref<2x1xf32, #tpu.memory_space<vmem>>, vector<2x1xf32>
    %cst_90 = arith.constant 9.99999974E-6 : f32
    %221 = arith.addf %219, %cst_90 : f32
    %222 = math.rsqrt %221 : f32
    %223 = vector.broadcast %222 : f32 to vector<2x1xf32>
    %224 = arith.mulf %220, %223 : vector<2x1xf32>
    %c0_91 = arith.constant 0 : index
    %c0_92 = arith.constant 0 : index
    %225 = vector.load %arg7[%c0_91, %c0_92] : memref<2x1xf32, #tpu.memory_space<vmem>>, vector<2x1xf32>
    %226 = vector.broadcast %211 : f32 to vector<2x1xf32>
    %227 = arith.mulf %226, %224 : vector<2x1xf32>
    %228 = arith.subf %225, %227 : vector<2x1xf32>
    %229 = vector.broadcast %224 : vector<2x1xf32> to vector<2x256xf32>
    %230 = arith.mulf %206, %229 : vector<2x256xf32>
    %231 = vector.broadcast %228 : vector<2x1xf32> to vector<2x256xf32>
    %232 = arith.addf %230, %231 : vector<2x256xf32>
    %cst_93 = arith.constant 0.000000e+00 : f32
    %233 = vector.broadcast %cst_93 : f32 to vector<2x256xf32>
    %234 = arith.maximumf %232, %233 : vector<2x256xf32>
    %c0_94 = arith.constant 0 : index
    %c0_95 = arith.constant 0 : index
    %235 = vector.load %arg14[%c0_94, %c0_95] : memref<4x2xbf16, #tpu.memory_space<vmem>>, vector<4x2xbf16>
    %236 = arith.truncf %204 : vector<2x256xf32> to vector<2x256xbf16>
    %cst_96 = arith.constant dense<0.000000e+00> : vector<4x256xf32>
    %237 = tpu.matmul %235, %236, %cst_96 {dimension_numbers = #tpu.dot_dimension_numbers<[1], [0], [0], [1], [0, 0, 1, 1], [], []>} : vector<4x2xbf16>, vector<2x256xbf16>, vector<4x256xf32> -> vector<4x256xf32>
    %c0_97 = arith.constant 0 : index
    %c0_98 = arith.constant 0 : index
    %238 = vector.load %arg15[%c0_97, %c0_98] : memref<4x2xbf16, #tpu.memory_space<vmem>>, vector<4x2xbf16>
    %239 = arith.truncf %234 : vector<2x256xf32> to vector<2x256xbf16>
    %cst_99 = arith.constant dense<0.000000e+00> : vector<4x256xf32>
    %240 = tpu.matmul %238, %239, %cst_99 {dimension_numbers = #tpu.dot_dimension_numbers<[1], [0], [0], [1], [0, 0, 1, 1], [], []>} : vector<4x2xbf16>, vector<2x256xbf16>, vector<4x256xf32> -> vector<4x256xf32>
    %241 = arith.addf %237, %240 : vector<4x256xf32>
    %242 = vector.shape_cast %241 : vector<4x256xf32> to vector<1x4x256xf32>
    %cst_100 = arith.constant dense<0.000000e+00> : vector<1xf32>
    %243 = vector.multi_reduction <add>, %242, %cst_100 [1, 2] : vector<1x4x256xf32> to vector<1xf32>
    %244 = vector.shape_cast %243 : vector<1xf32> to vector<1x1x1xf32>
    %245 = vector.extract %244[0, 0, 0] : f32 from vector<1x1x1xf32>
    %cst_101 = arith.constant 1.024000e+03 : f32
    %246 = arith.divf %245, %cst_101 : f32
    %247 = vector.broadcast %246 : f32 to vector<4x256xf32>
    %248 = arith.subf %241, %247 : vector<4x256xf32>
    %249 = arith.mulf %248, %248 : vector<4x256xf32>
    %250 = vector.shape_cast %249 : vector<4x256xf32> to vector<1x4x256xf32>
    %cst_102 = arith.constant dense<0.000000e+00> : vector<1xf32>
    %251 = vector.multi_reduction <add>, %250, %cst_102 [1, 2] : vector<1x4x256xf32> to vector<1xf32>
    %252 = vector.shape_cast %251 : vector<1xf32> to vector<1x1x1xf32>
    %253 = vector.extract %252[0, 0, 0] : f32 from vector<1x1x1xf32>
    %cst_103 = arith.constant 1.024000e+03 : f32
    %254 = arith.divf %253, %cst_103 : f32
    %c0_104 = arith.constant 0 : index
    %c0_105 = arith.constant 0 : index
    %255 = vector.load %arg16[%c0_104, %c0_105] : memref<4x1xf32, #tpu.memory_space<vmem>>, vector<4x1xf32>
    %cst_106 = arith.constant 9.99999974E-6 : f32
    %256 = arith.addf %254, %cst_106 : f32
    %257 = math.rsqrt %256 : f32
    %258 = vector.broadcast %257 : f32 to vector<4x1xf32>
    %259 = arith.mulf %255, %258 : vector<4x1xf32>
    %c0_107 = arith.constant 0 : index
    %c0_108 = arith.constant 0 : index
    %260 = vector.load %arg17[%c0_107, %c0_108] : memref<4x1xf32, #tpu.memory_space<vmem>>, vector<4x1xf32>
    %261 = vector.broadcast %246 : f32 to vector<4x1xf32>
    %262 = arith.mulf %261, %259 : vector<4x1xf32>
    %263 = arith.subf %260, %262 : vector<4x1xf32>
    %264 = vector.broadcast %259 : vector<4x1xf32> to vector<4x256xf32>
    %265 = arith.mulf %241, %264 : vector<4x256xf32>
    %266 = vector.broadcast %263 : vector<4x1xf32> to vector<4x256xf32>
    %267 = arith.addf %265, %266 : vector<4x256xf32>
    %cst_109 = arith.constant 0.000000e+00 : f32
    %268 = vector.broadcast %cst_109 : f32 to vector<4x256xf32>
    %269 = arith.maximumf %267, %268 : vector<4x256xf32>
    %c0_110 = arith.constant 0 : index
    %c0_111 = arith.constant 0 : index
    %c0_112 = arith.constant 0 : index
    %270 = vector.load %arg18[%c0_110, %c0_111, %c0_112] : memref<1x4x256xf32, #tpu.memory_space<vmem>>, vector<1x4x256xf32>
    %271 = vector.shape_cast %270 : vector<1x4x256xf32> to vector<4x256xf32>
    %272 = vector.shape_cast %269 : vector<4x256xf32> to vector<1x4x256xf32>
    tpu.vector_store %arg18[%c0_110, %c0_111, %c0_112], %272 {strides = array<i32>} : memref<1x4x256xf32, #tpu.memory_space<vmem>>, vector<1x4x256xf32>,
    return
  }
  func.func @transform_0(%arg0: i32) -> (i32, i32, i32) {
    %c0_i32 = arith.constant 0 : i32
    %c0_i32_0 = arith.constant 0 : i32
    %c0_i32_1 = arith.constant 0 : i32
    return %arg0, %c0_i32, %c0_i32_0 : i32, i32, i32
  }
  func.func @transform_1(%arg0: i32) -> (i32, i32) {
    %c0_i32 = arith.constant 0 : i32
    %c0_i32_0 = arith.constant 0 : i32
    %c0_i32_1 = arith.constant 0 : i32
    return %c0_i32, %c0_i32_0 : i32, i32
  }
  func.func @transform_2(%arg0: i32) -> (i32, i32) {
    %c0_i32 = arith.constant 0 : i32
    %c0_i32_0 = arith.constant 0 : i32
    %c0_i32_1 = arith.constant 0 : i32
    return %c0_i32, %c0_i32_0 : i32, i32
  }
  func.func @transform_3(%arg0: i32) -> (i32, i32) {
    %c0_i32 = arith.constant 0 : i32
    %c0_i32_0 = arith.constant 0 : i32
    %c0_i32_1 = arith.constant 0 : i32
    return %c0_i32, %c0_i32_0 : i32, i32
  }
  func.func @transform_4(%arg0: i32) -> (i32, i32) {
    %c0_i32 = arith.constant 0 : i32
    %c0_i32_0 = arith.constant 0 : i32
    %c0_i32_1 = arith.constant 0 : i32
    return %c0_i32, %c0_i32_0 : i32, i32
  }
  func.func @transform_5(%arg0: i32) -> (i32, i32) {
    %c0_i32 = arith.constant 0 : i32
    %c0_i32_0 = arith.constant 0 : i32
    %c0_i32_1 = arith.constant 0 : i32
    return %c0_i32, %c0_i32_0 : i32, i32
  }
  func.func @transform_6(%arg0: i32) -> (i32, i32) {
    %c0_i32 = arith.constant 0 : i32
    %c0_i32_0 = arith.constant 0 : i32
    %c0_i32_1 = arith.constant 0 : i32
    return %c0_i32, %c0_i32_0 : i32, i32
  }
  func.func @transform_7(%arg0: i32) -> (i32, i32) {
    %c0_i32 = arith.constant 0 : i32
    %c0_i32_0 = arith.constant 0 : i32
    %c0_i32_1 = arith.constant 0 : i32
    return %c0_i32, %c0_i32_0 : i32, i32
  }
  func.func @transform_8(%arg0: i32) -> (i32, i32) {
    %c0_i32 = arith.constant 0 : i32
    %c0_i32_0 = arith.constant 0 : i32
    %c0_i32_1 = arith.constant 0 : i32
    return %c0_i32, %c0_i32_0 : i32, i32
  }
  func.func @transform_9(%arg0: i32) -> (i32, i32) {
    %c0_i32 = arith.constant 0 : i32
    %c0_i32_0 = arith.constant 0 : i32
    %c0_i32_1 = arith.constant 0 : i32
    return %c0_i32, %c0_i32_0 : i32, i32
  }
  func.func @transform_10(%arg0: i32) -> (i32, i32, i32) {
    %c0_i32 = arith.constant 0 : i32
    %c0_i32_0 = arith.constant 0 : i32
    %c0_i32_1 = arith.constant 0 : i32
    %c0_i32_2 = arith.constant 0 : i32
    return %c0_i32, %c0_i32_0, %c0_i32_1 : i32, i32, i32
  }
  func.func @transform_11(%arg0: i32) -> (i32, i32) {
    %c0_i32 = arith.constant 0 : i32
    %c0_i32_0 = arith.constant 0 : i32
    %c0_i32_1 = arith.constant 0 : i32
    return %c0_i32, %c0_i32_0 : i32, i32
  }
  func.func @transform_12(%arg0: i32) -> (i32, i32) {
    %c0_i32 = arith.constant 0 : i32
    %c0_i32_0 = arith.constant 0 : i32
    %c0_i32_1 = arith.constant 0 : i32
    return %c0_i32, %c0_i32_0 : i32, i32
  }
  func.func @transform_13(%arg0: i32) -> (i32, i32) {
    %c0_i32 = arith.constant 0 : i32
    %c0_i32_0 = arith.constant 0 : i32
    %c0_i32_1 = arith.constant 0 : i32
    return %c0_i32, %c0_i32_0 : i32, i32
  }
  func.func @transform_14(%arg0: i32) -> (i32, i32) {
    %c0_i32 = arith.constant 0 : i32
    %c0_i32_0 = arith.constant 0 : i32
    %c0_i32_1 = arith.constant 0 : i32
    return %c0_i32, %c0_i32_0 : i32, i32
  }
  func.func @transform_15(%arg0: i32) -> (i32, i32) {
    %c0_i32 = arith.constant 0 : i32
    %c0_i32_0 = arith.constant 0 : i32
    %c0_i32_1 = arith.constant 0 : i32
    return %c0_i32, %c0_i32_0 : i32, i32
  }
  func.func @transform_16(%arg0: i32) -> (i32, i32) {
    %c0_i32 = arith.constant 0 : i32
    %c0_i32_0 = arith.constant 0 : i32
    %c0_i32_1 = arith.constant 0 : i32
    return %c0_i32, %c0_i32_0 : i32, i32
  }
  func.func @transform_17(%arg0: i32) -> (i32, i32, i32) {
    %c0_i32 = arith.constant 0 : i32
    %c0_i32_0 = arith.constant 0 : i32
    %c0_i32_1 = arith.constant 0 : i32
    return %arg0, %c0_i32, %c0_i32_0 : i32, i32, i32
  }
}

</mosaic_0001>

<bundles_post_ra>
// kernel: tpu_custom_call.1
= control target key start
LH: loop header
LB: loop body
LE: loop exit
PB: predicated region body
PF: predicated region fallthrough
CT: control target
= control target key end

     0   :  { %s2574_s0 = inlined_call_operand.vmem [shape: bf16[2,4,256], index: 0, kind: input, shape index: {}]   ;;  %s2575_s1 = inlined_call_operand.vmem [shape: bf16[2,4], index: 1, kind: input, shape index: {}]   ;;  %s2576_s2 = inlined_call_operand.vmem [shape: f32[2,1], index: 2, kind: input, shape index: {}]   ;;  %s2577_s3 = inlined_call_operand.vmem [shape: f32[2,1], index: 3, kind: input, shape index: {}]   ;;  %s2578_s4 = inlined_call_operand.vmem [shape: bf16[2,4], index: 4, kind: input, shape index: {}]   ;;  %s2579_s5 = inlined_call_operand.vmem [shape: f32[2,1], index: 5, kind: input, shape index: {}]   ;;  %s2580_s6 = inlined_call_operand.vmem [shape: f32[2,1], index: 6, kind: input, shape index: {}]   ;;  %s2581_s7 = inlined_call_operand.vmem [shape: bf16[2,2], index: 7, kind: input, shape index: {}]   ;;  %s2582_s8 = inlined_call_operand.vmem [shape: f32[2,1], index: 8, kind: input, shape index: {}]   ;;  %s2583_s9 = inlined_call_operand.vmem [shape: f32[2,1], index: 9, kind: input, shape index: {}]   ;;  %s2584_s10 = inlined_call_operand.vmem [shape: bf16[9,2,2], index: 10, kind: input, shape index: {}]   ;;  %s2585_s11 = inlined_call_operand.vmem [shape: f32[2,1], index: 11, kind: input, shape index: {}]   ;;  %s2586_s12 = inlined_call_operand.vmem [shape: f32[2,1], index: 12, kind: input, shape index: {}]   ;;  %s2587_s13 = inlined_call_operand.vmem [shape: bf16[4,2], index: 13, kind: input, shape index: {}]   ;;  %s2588_s14 = inlined_call_operand.vmem [shape: bf16[4,2], index: 14, kind: input, shape index: {}]   ;;  %s2589_s15 = inlined_call_operand.vmem [shape: f32[4,1], index: 15, kind: input, shape index: {}]   ;;  %s2590_s16 = inlined_call_operand.vmem [shape: f32[4,1], index: 16, kind: input, shape index: {}]   ;;  %s2591_s17 = inlined_call_operand.hbm [shape: f32[2,4,256], index: 17, kind: output, shape index: {}]  }
   0x1   :  { %2595 = sst [smem:[#allocation8_spill]] %s2574_s0 }
   0x2   :  { %2596 = sst [smem:[#allocation9_spill]] %s2575_s1 }
   0x3   :  { %2597 = sst [smem:[#allocation10_spill]] %s2576_s2 }
   0x4   :  { %2598 = sst [smem:[#allocation11_spill]] %s2577_s3 }
   0x5   :  { %2599 = sst [smem:[#allocation12_spill]] %s2578_s4 }
   0x6   :  { %22 = vsyncpa [#allocation3], 0 }
   0x7   :  { %24 = vsyncpa [#allocation3 + $0x1], 0  ;;  %s2193_s24 = smov 0   ;;  %s2195_s25 = smov 0  }
   0x8   :  { %s2197_s26 = smov 0   ;;  %s2199_s27 = smov 0  }
   0x9 LB: > { %2600 = sst [smem:[#allocation5_spill]] %s2087_s26  ;;  %s2214_s28 = sadd.s32 4294967295, %s2091_s27   ;;  %s2091_s27 = sphi %s2199_s27, %s2618_s27   ;;  %s2087_s26 = sphi %s2197_s26, %s2620_s26   ;;  %s2083_s25 = sphi %s2195_s25, %s2622_s25   ;;  %s2079_s24 = sphi %s2193_s24, %s2621_s24  }
   0xa   : > { %s1850_s29 = sadd.s32 4294967294, %s2091_s27   ;;  %s2218_s0 = sadd.s32 1, %s2091_s27  }
   0xb   : > { %2601 = sst [smem:[#allocation6_spill]] %s2218_s0  ;;  %s399_s30 = sadd.s32 1, %s2087_s26 }
   0xc   : > { %s396_s18 = ssub.s32 %s2091_s27, %s2218_s0  ;;  %p409_p0 = scmp.ne.s32.totalorder %s2087_s26, %s2083_s25 }
   0xd   : > { %p397_p1 = scmp.eq.s32.totalorder %s396_s18, 0  ;;  %p410_p2 = scmp.eq.s32.totalorder %s2214_s28, 1 }
   0xe   : > { %p415_p3 = scmp.ne.s32.totalorder %s2083_s25, %s2079_s24  ;;  %p416_p4 = scmp.eq.s32.totalorder %s1850_s29, 1 }
   0xf   : > { %s2229_s19 = scalar_select %p397_p1, %s2087_s26, %s399_s30  }
  0x10   : > { %p2231_p5 = por %p410_p2, %p409_p0  ;;  %p2235_p6 = por %p416_p4, %p415_p3 }
  0x11   : > { %2602 = sst [smem:[#allocation7_spill]] %s2229_s19  ;;  %p1853_p7 = scmp.ge.s32.totalorder %s2091_s27, 1 }
  0x12   : > { %p490_p8 = scmp.lt.s32.totalorder %s2091_s27, 3 }
  0x14   : > { %p491_p9 = pnand %p1853_p7, %p490_p8 }
  0x15   : > { %p542_p10 = scmp.lt.s32.totalorder (!%p491_p9), %s2214_s28, 1  ;;  %s2605_s30 = sld [smem:[#allocation8_spill]] (!%p491_p9) }
  0x16   : > { %494 = sbr.rel (%p491_p9) target bundleno = 3757 (0xead), region = 88  ;;  %s2606_s0 = sld [smem:[#allocation9_spill]] (!%p491_p9) }
  0x17   : > { %s2607_s2 = sld [smem:[#allocation10_spill]] (!%p491_p9) }
  0x18   : > { %s2608_s3 = sld [smem:[#allocation11_spill]] (!%p491_p9) }
  0x19   : > { %s2617_s4 = sld [smem:[#allocation12_spill]] (!%p491_p9) }
  0x1b   : > { %v2093_v0 = vmov 0   ;;  %s543_s21 = scalar_select %p542_p10, %s2214_s28, 1  ;;  %vm606_vm0 = vcmask 1041408   ;;  %vm602_vm1 = vcmask 31744   ;;  %vm722_vm2 = vcmask 1040384  }
  0x1c   : > { %645 = vmatprep.mubr.bf16.mxu0 %v2093_v0  ;;  %1979 = vset.pattern.permute.xlu1 %v2093_v0  ;;  %v592_v4 = vld [vmem:[%s2606_s0] sm:$0x1]  ;;  %vm718_vm3 = vcmask 15360  }
  0x1d   : > { %761 = vmatprep.mubr.bf16.mxu1 %v2093_v0  ;;  %1980 = vset.pattern.permute.xlu0 %v2093_v0  ;;  %s1899_s22 = sshll.u32 %s543_s21, 2  ;;  %v689_v36 = vld [vmem:[%s2607_s2] sm:$0x3] }
  0x1e   : > { %s546_s18 = scalar_lea.vmem %s2605_s30, %s1899_s22  ;;  %v696_v39 = vld [vmem:[%s2608_s3] sm:$0x3]  ;;  %s2102_s3 = smov [#allocation2]  }
  0x1f   : > { %v1857_v1 = vld.sshfl [vmem:[%s546_s18] sm:$0x33 pattern:$0x76325410]  ;;  %s2098_s18 = smov 112  }
  0x20   : > { %v2250_v2 = vcombine.high %v1857_v1, %v1857_v1  ;;  %v2253_v3 = vsel %vm606_vm0, %v1857_v1, 0  ;;  %v715_v53 = vld [vmem:[%s2581_s7] sm:$0x1] }
  0x22   : > { %1858 = vmatprep.subr.msk.bf16.mxu0 %vm606_vm0, %v2250_v2 }
  0x23   : > { %628 = vmatpush1.bf16.msra.mxu0 %v2253_v3 }
  0x26   : > { %1859 = vmatmul.mubr.msk.bf16.vlgmr.msra.gmra.mxu0 %vm602_vm1, %v592_v4 }
  0x27   : > { %905 = vmatprep.mubr.bf16.mxu0 %v2093_v0 }
  0xe6   : > { %v647_v5 = vpop.f32.mrf.mxu0 }
  0xe7   : > { %v654_v7 = vsel %vm606_vm0, %v647_v5, 0.0 }
  0xe8   : > { %v649_v6 = vpop.f32.mrf.mxu0 }
  0xe9   : > { %v655_v8 = vsel %vm606_vm0, %v649_v6, 0.0 }
  0xea   : > { %v651_v9 = vpop.f32.mrf.mxu0  ;;  %v656_v10 = vadd.f32 %v655_v8, %v654_v7 }
  0xec   : > { %657 = vadd.xlane.f32.xlu0 %v656_v10  ;;  %v652_v11 = vpop.f32.mrf.mxu0 }
 0x175   : > { %v658_v12 = vpop.xlane.xlu0 %657 }
 0x176   : > { %v659_v13 = vrot.slane %v658_v12, 4 }
 0x178   : > { %v660_v14 = vadd.f32 %v659_v13, %v658_v12 }
 0x17a   : > { %v661_v15 = vrot.slane %v660_v14, 2 }
 0x17c   : > { %v662_v16 = vadd.f32 %v661_v15, %v660_v14 }
 0x17e   : > { %v663_v17 = vrot.slane %v662_v16, 1 }
 0x180   : > { %v664_v18 = vadd.f32 %v663_v17, %v662_v16 }
 0x182   : > { %1901 = vpush %v664_v18 }
 0x1b3   : > { %s1902_s26 = spop %1901 }
 0x1b4   : > { %s668_s0 = smul.f32 0.001953125, %s1902_s26  ;;  %s2099_s26 = smov 1  }
 0x1b6   : > { %v669_v19 = vstv %s668_s0 }
 0x1b7   : > { %v670_v20 = vsub.f32 %v647_v5, %v669_v19  ;;  %v671_v21 = vsub.f32 %v649_v6, %v669_v19 }
 0x1b9   : > { %v672_v22 = vmul.f32 %v670_v20, %v670_v20  ;;  %v673_v23 = vmul.f32 %v671_v21, %v671_v21 }
 0x1bb   : > { %v674_v24 = vsel %vm606_vm0, %v672_v22, 0.0  ;;  %v675_v25 = vsel %vm606_vm0, %v673_v23, 0.0 }
 0x1bc   : > { %v676_v26 = vadd.f32 %v675_v25, %v674_v24  ;;  %v805_v24 = vld [vmem:[%s2582_s8] sm:$0x3] }
 0x1be   : > { %677 = vadd.xlane.f32.xlu0 %v676_v26 }
 0x247   : > { %v678_v27 = vpop.xlane.xlu0 %677 }
 0x248   : > { %v679_v28 = vrot.slane %v678_v27, 4 }
 0x24a   : > { %v680_v29 = vadd.f32 %v679_v28, %v678_v27  ;;  %v812_v27 = vld [vmem:[%s2583_s9] sm:$0x3] }
 0x24c   : > { %v681_v30 = vrot.slane %v680_v29, 2 }
 0x24e   : > { %v682_v31 = vadd.f32 %v681_v30, %v680_v29 }
 0x250   : > { %v683_v32 = vrot.slane %v682_v31, 1 }
 0x252   : > { %v684_v33 = vadd.f32 %v683_v32, %v682_v31 }
 0x254   : > { %1903 = vpush %v684_v33 }
 0x285   : > { %s1904_s19 = spop %1903 }
 0x286   : > { %s688_s21 = smul.f32 0.001953125, %s1904_s19  ;;  %s2101_s19 = smov 111  }
 0x288   : > { %s690_s22 = sadd.f32 1e-05, %s688_s21 }
 0x28a   : > { %v691_v34 = vstv %s690_s22 }
 0x28b   : > { %2021 = vrsqrt.f32 %v691_v34 }
 0x298   : > { %v2022_v35 = vpop.eup %2021 }
 0x299   : > { %1905 = vpush %v2022_v35 }
 0x2ca   : > { %s1906_s30 = spop %1905 }
 0x2cb   : > { %v694_v37 = vstv %s1906_s30 }
 0x2cc   : > { %v695_v38 = vmul.f32 %v694_v37, %v689_v36 }
 0x2ce   : > { %701 = vperm.xlu1 %1979, %v695_v38   ;;  %v697_v40 = vmul.f32 %v695_v38, %v669_v19 }
 0x2d0   : > { %v698_v41 = vsub.f32 %v696_v39, %v697_v40  ;;  %v548_v39 = vlaneseq }
 0x2d2   : > { %708 = vperm.xlu1 %1979, %v698_v41   ;;  %v2304_v40 = vand.u32 127, %v548_v39  ;;  %v844_v39 = vld [vmem:[%s2584_s10] sm:$0x1] }
 0x2d4   : > { %v2307_v41 = vadd.s32 128, %v2304_v40  ;;  %vm579_vm4 = vcmp.ge.s32.totalorder %v2304_v40, 16  ;;  %vm968_vm7 = vcmp.lt.s32.totalorder %v2304_v40, 15  ;;  %vm851_vm8 = vcmp.lt.s32.totalorder %v2304_v40, 16 }
 0x2d5   : > { %vm1162_vm10 = vcmp.lt.s32.totalorder %v2304_v40, 127  ;;  %vm835_vm12 = vcmp.lt.s32.totalorder %v2304_v40, 17  ;;  %vm1037_vm15 = vcmp.lt.s32.totalorder %v2304_v40, 1 }
 0x349   : > { %v702_v42 = vpop.permute.xlu1 %701 }
 0x34a   : > { %v704_v43 = vmul.f32 %v702_v42, %v647_v5  ;;  %v705_v44 = vmul.f32 %v702_v42, %v649_v6  ;;  %v555_v42 = vand.u32 15, %v2304_v40 }
 0x34c   : > { %vm2312_vm5 = vcmp.le.s32.totalorder %v555_v42, 14  ;;  %vm2332_vm13 = vcmp.ge.s32.totalorder %v555_v42, 1 }
 0x34d   : > { %v709_v45 = vpop.permute.xlu1 %708  ;;  %vm585_vm9 = vmand %vm579_vm4, %vm2312_vm5 }
 0x34e   : > { %v711_v46 = vadd.f32 %v709_v45, %v704_v43  ;;  %v712_v47 = vadd.f32 %v709_v45, %v705_v44  ;;  %v562_v43 = vand.u32 15, %v2307_v41  ;;  %vm583_vm14 = vmand %vm579_vm4, %vm2332_vm13  ;;  %v1873_v45 = vld [vmem:[%s2584_s10 + $0x4] sm:$0x1] }
 0x350   : > { %v2273_v48 = vmax.f32 %v711_v46, 0.0  ;;  %v2275_v49 = vmax.f32 %v712_v47, 0.0  ;;  %vm2316_vm6 = vcmp.le.s32.totalorder %v562_v43, 14  ;;  %vm2327_vm11 = vcmp.ge.s32.totalorder %v562_v43, 1 }
 0x352   : > { %v717_v50 = vpack.c.bf16 %v2275_v49, %v2275_v49  ;;  %v716_v51 = vpack.c.bf16 %v2273_v48, %v2273_v48 }
 0x354   : > { %1860 = vmatprep.subr.msk.bf16.mxu1 %vm722_vm2, %v717_v50  ;;  %v724_v52 = vsel %vm722_vm2, %v716_v51, 0 }
 0x355   : > { %744 = vmatpush1.bf16.msra.mxu1 %v724_v52 }
 0x358   : > { %1861 = vmatmul.mubr.msk.bf16.vlgmr.msra.gmra.mxu1 %vm718_vm3, %v715_v53 }
 0x359   : > { %955 = vmatprep.mubr.bf16.mxu1 %v2093_v0 }
 0x418   : > { %v763_v54 = vpop.f32.mrf.mxu1 }
 0x419   : > { %v770_v56 = vsel %vm606_vm0, %v763_v54, 0.0 }
 0x41a   : > { %v765_v55 = vpop.f32.mrf.mxu1 }
 0x41b   : > { %v771_v57 = vsel %vm606_vm0, %v765_v55, 0.0 }
 0x41c   : > { %v767_v58 = vpop.f32.mrf.mxu1  ;;  %v772_v59 = vadd.f32 %v771_v57, %v770_v56 }
 0x41e   : > { %773 = vadd.xlane.f32.xlu0 %v772_v59  ;;  %v768_v60 = vpop.f32.mrf.mxu1 }
 0x4a7   : > { %v774_v61 = vpop.xlane.xlu0 %773 }
 0x4a8   : > { %v775_v62 = vrot.slane %v774_v61, 4 }
 0x4aa   : > { %v776_v63 = vadd.f32 %v775_v62, %v774_v61 }
 0x4ac   : > { %v777_v1 = vrot.slane %v776_v63, 2 }
 0x4ae   : > { %v778_v4 = vadd.f32 %v777_v1, %v776_v63 }
 0x4b0   : > { %v779_v5 = vrot.slane %v778_v4, 1 }
 0x4b2   : > { %v780_v6 = vadd.f32 %v779_v5, %v778_v4 }
 0x4b4   : > { %1907 = vpush %v780_v6 }
 0x4e5   : > { %s1908_s21 = spop %1907 }
 0x4e6   : > { %s784_s22 = smul.f32 0.001953125, %s1908_s21 }
 0x4e8   : > { %v785_v7 = vstv %s784_s22  ;;  %s2094_s22 = smov 15  }
 0x4e9   : > { %v786_v8 = vsub.f32 %v763_v54, %v785_v7  ;;  %v787_v9 = vsub.f32 %v765_v55, %v785_v7 }
 0x4eb   : > { %v788_v10 = vmul.f32 %v786_v8, %v786_v8  ;;  %v789_v11 = vmul.f32 %v787_v9, %v787_v9 }
 0x4ed   : > { %v790_v12 = vsel %vm606_vm0, %v788_v10, 0.0  ;;  %v791_v13 = vsel %vm606_vm0, %v789_v11, 0.0 }
 0x4ee   : > { %v792_v14 = vadd.f32 %v791_v13, %v790_v12 }
 0x4f0   : > { %793 = vadd.xlane.f32.xlu1 %v792_v14 }
 0x579   : > { %v794_v15 = vpop.xlane.xlu1 %793 }
 0x57a   : > { %v795_v16 = vrot.slane %v794_v15, 4 }
 0x57c   : > { %v796_v17 = vadd.f32 %v795_v16, %v794_v15 }
 0x57e   : > { %v797_v18 = vrot.slane %v796_v17, 2 }
 0x580   : > { %v798_v19 = vadd.f32 %v797_v18, %v796_v17 }
 0x582   : > { %v799_v20 = vrot.slane %v798_v19, 1 }
 0x584   : > { %v800_v21 = vadd.f32 %v799_v20, %v798_v19 }
 0x586   : > { %1909 = vpush %v800_v21 }
 0x5b7   : > { %s1910_s23 = spop %1909 }
 0x5b8   : > { %s804_s29 = smul.f32 0.001953125, %s1910_s23  ;;  %s2095_s23 = smov 16  }
 0x5ba   : > { %s806_s30 = sadd.f32 1e-05, %s804_s29  ;;  %s2096_s29 = smov 127  }
 0x5bc   : > { %v807_v22 = vstv %s806_s30  ;;  %s2097_s30 = smov 17  }
 0x5bd   : > { %2023 = vrsqrt.f32 %v807_v22  ;;  %v1862_v22 = vld [vmem:[%s2584_s10 + $0x1] sm:$0x1] }
 0x5ca   : > { %v2024_v23 = vpop.eup %2023 }
 0x5cb   : > { %1911 = vpush %v2024_v23 }
 0x5fc   : > { %s1912_s0 = spop %1911 }
 0x5fd   : > { %v810_v25 = vstv %s1912_s0  ;;  %s2100_s0 = smov 113  }
 0x5fe   : > { %v811_v26 = vmul.f32 %v810_v25, %v805_v24 }
 0x600   : > { %v813_v28 = vmul.f32 %v811_v26, %v785_v7  ;;  %817 = vperm.xlu0 %1980, %v811_v26  }
 0x602   : > { %v814_v29 = vsub.f32 %v812_v27, %v813_v28 }
 0x604   : > { %824 = vperm.xlu1 %1979, %v814_v29  }
 0x67b   : > { %v818_v30 = vpop.permute.xlu0 %817 }
 0x67c   : > { %v820_v31 = vmul.f32 %v818_v30, %v763_v54  ;;  %v821_v32 = vmul.f32 %v818_v30, %v765_v55 }
 0x67f   : > { %v825_v33 = vpop.permute.xlu1 %824 }
 0x680   : > { %v827_v34 = vadd.f32 %v825_v33, %v820_v31  ;;  %v828_v35 = vadd.f32 %v825_v33, %v821_v32 }
 0x682   : > { %v2298_v36 = vmax.f32 %v827_v34, 0.0  ;;  %v2300_v37 = vmax.f32 %v828_v35, 0.0 }
 0x684   : > { %v1991_v38 = vpack.i.bf16 %v2300_v37, %v2298_v36  ;;  %v1105_v26 = vpack.c.bf16 %v2300_v37, %v2300_v37  ;;  %v1104_v54 = vpack.c.bf16 %v2298_v36, %v2298_v36 }
 0x686   : > { %1992 = vrot.lane.b32.xlu1 %v1991_v38, %s2094_s22  ;;  %1982 = vrot.lane.b32.xlu0 %v1991_v38, %s2095_s23 }
 0x68a   : > { %2002 = vrot.lane.b32.xlu1 %v1991_v38, %s2096_s29  ;;  %1987 = vrot.lane.b32.xlu0 %v1991_v38, %s2097_s30 }
 0x68e   : > { %2012 = vrot.lane.b32.xlu1 %v1991_v38, %s2098_s18  ;;  %1997 = vrot.lane.b32.xlu0 %v1991_v38, %s2099_s26 }
 0x692   : > { %2007 = vrot.lane.b32.xlu0 %v1991_v38, %s2100_s0 }
 0x696   : > { %2017 = vrot.lane.b32.xlu0 %v1991_v38, %s2101_s19 }
 0x6f8   : > { %v1993_v46 = vpop.permute.xlu1 %1992  ;;  %v1983_v47 = vpop.permute.xlu0 %1982 }
 0x6f9   : > { %v1995_v50 = vunpack.i.h.bf16 %v1993_v46  ;;  %v1994_v51 = vunpack.i.l.bf16 %v1993_v46  ;;  %v1985_v52 = vunpack.i.h.bf16 %v1983_v47  ;;  %v1984_v53 = vunpack.i.l.bf16 %v1983_v47 }
 0x6fb   : > { %v969_v56 = vsel %vm968_vm7, %v1994_v51, %v1995_v50  ;;  %v970_v57 = vsel %vm968_vm7, %v1995_v50, %v1994_v51  ;;  %v852_v58 = vsel %vm851_vm8, %v1984_v53, %v1985_v52  ;;  %v853_v59 = vsel %vm851_vm8, %v1985_v52, %v1984_v53 }
 0x6fc   : > { %v976_v60 = vsel %vm2316_vm6, %v969_v56, 0.0  ;;  %v863_v61 = vpack.c.bf16 %v852_v58, %v852_v58  ;;  %v2003_v62 = vpop.permute.xlu1 %2002  ;;  %v1988_v63 = vpop.permute.xlu0 %1987  ;;  %v858_v1 = vsel %vm579_vm4, %v853_v59, 0.0  ;;  %v975_v4 = vsel %vm585_vm9, %v970_v57, 0.0  ;;  %v1867_v57 = vld [vmem:[%s2584_s10 + $0x2] sm:$0x1] }
 0x6fd   : > { %v2005_v5 = vunpack.i.h.bf16 %v2003_v62  ;;  %v2004_v6 = vunpack.i.l.bf16 %v2003_v62  ;;  %v1990_v7 = vunpack.i.h.bf16 %v1988_v63  ;;  %v1989_v8 = vunpack.i.l.bf16 %v1988_v63 }
 0x6fe   : > { %1863 = vmatprep.subr.msk.bf16.mxu0 %vm722_vm2, %v863_v61  ;;  %v862_v9 = vpack.c.bf16 %v858_v1, %v858_v1  ;;  %v980_v13 = vpack.c.bf16 %v976_v60, %v976_v60  ;;  %v979_v19 = vpack.c.bf16 %v975_v4, %v975_v4  ;;  %vm582_vm4 = vcmp.lt.s32.totalorder %v2307_v41, 240  ;;  %v1870_v4 = vld [vmem:[%s2584_s10 + $0x3] sm:$0x1] }
 0x6ff   : > { %v1164_v10 = vsel %vm1162_vm10, %v2005_v5, %v2004_v6  ;;  %v836_v11 = vsel %vm835_vm12, %v1989_v8, %v1990_v7  ;;  %v837_v12 = vsel %vm835_vm12, %v1990_v7, %v1989_v8  ;;  %vm1231_vm7 = vcmp.lt.s32.totalorder %v2304_v40, 113  ;;  %vm588_vm8 = vmand %vm582_vm4, %vm2327_vm11 }
 0x700   : > { %v843_v14 = vsel %vm2327_vm11, %v836_v11, 0.0  ;;  %v2354_v15 = vpop.permute.xlu1 %2012  ;;  %v1998_v16 = vpop.permute.xlu0 %1997  ;;  %v868_v17 = vsel %vm722_vm2, %v862_v9, 0  ;;  %v842_v18 = vsel %vm583_vm14, %v837_v12, 0.0  ;;  %v1170_v23 = vsel %vm2316_vm6, %v1164_v10, 0.0 }
 0x701   : > { %v2000_v20 = vunpack.i.h.bf16 %v1998_v16  ;;  %v1999_v21 = vunpack.i.l.bf16 %v1998_v16  ;;  %888 = vmatpush1.bf16.msra.mxu0 %v868_v17  ;;  %v846_v24 = vpack.c.bf16 %v843_v14, %v843_v14  ;;  %v845_v25 = vpack.c.bf16 %v842_v18, %v842_v18  ;;  %v1876_v14 = vld [vmem:[%s2584_s10 + $0x5] sm:$0x1]  ;;  %v1879_v17 = vld [vmem:[%s2584_s10 + $0x6] sm:$0x1]  ;;  %v1882_v18 = vld [vmem:[%s2584_s10 + $0x7] sm:$0x1] }
 0x702   : > { %1868 = vmatprep.subr.msk.bf16.mxu0 %vm722_vm2, %v980_v13  ;;  %v2015_v27 = vunpack.i.h.bf16 %v2354_v15  ;;  %v2014_v28 = vunpack.i.l.bf16 %v2354_v15  ;;  %v985_v34 = vsel %vm722_vm2, %v979_v19, 0  ;;  %v1163_v46 = vsel %vm1162_vm10, %v2004_v6, %v2005_v5  ;;  %v1885_v19 = vld [vmem:[%s2584_s10 + $0x8] sm:$0x1] }
 0x703   : > { %v1038_v29 = vsel %vm1037_vm15, %v1999_v21, %v2000_v20  ;;  %v1039_v30 = vsel %vm1037_vm15, %v2000_v20, %v1999_v21  ;;  %1865 = vmatprep.subr.msk.bf16.mxu1 %vm722_vm2, %v846_v24  ;;  %v918_v33 = vsel %vm722_vm2, %v845_v25, 0  ;;  %vm1300_vm9 = vcmp.lt.s32.totalorder %v2304_v40, 112 }
 0x704   : > { %v1045_v31 = vsel %vm2327_vm11, %v1038_v29, 0.0  ;;  %1864 = vmatmul.mubr.msk.bf16.vlgmr.msra.gmra.mxu0 %vm718_vm3, %v1862_v22  ;;  %v2008_v32 = vpop.permute.xlu0 %2007  ;;  %v1044_v35 = vsel %vm2332_vm13, %v1039_v30, 0.0  ;;  %938 = vmatpush1.bf16.msra.mxu1 %v918_v33  ;;  %v1174_v53 = vpack.c.bf16 %v1170_v23, %v1170_v23  ;;  %v1302_v56 = vsel %vm1300_vm9, %v2015_v27, %v2014_v28  ;;  %vm590_vm11 = vmand %vm582_vm4, %vm2316_vm6 }
 0x705   : > { %v2010_v37 = vunpack.i.h.bf16 %v2008_v32  ;;  %v2009_v38 = vunpack.i.l.bf16 %v2008_v32  ;;  %1005 = vmatpush1.bf16.msra.mxu0 %v985_v34  ;;  %v1049_v42 = vpack.c.bf16 %v1045_v31, %v1045_v31  ;;  %v1048_v43 = vpack.c.bf16 %v1044_v35, %v1044_v35  ;;  %1022 = vmatprep.mubr.bf16.mxu0 %v2093_v0 }
 0x706   : > { %1874 = vmatprep.subr.msk.bf16.mxu0 %vm722_vm2, %v1105_v26  ;;  %v1169_v58 = vsel %vm2312_vm5, %v1163_v46, 0.0  ;;  %vm1369_vm10 = vcmp.lt.s32.totalorder %v2304_v40, 111  ;;  %v1110_v62 = vsel %vm722_vm2, %v1104_v54, 0  ;;  %v1308_v1 = vsel %vm582_vm4, %v1302_v56, 0.0 }
 0x707   : > { %v1233_v47 = vsel %vm1231_vm7, %v2010_v37, %v2009_v38  ;;  %1871 = vmatprep.subr.msk.bf16.mxu1 %vm722_vm2, %v1049_v42  ;;  %v1054_v50 = vsel %vm722_vm2, %v1048_v43, 0  ;;  %1866 = vmatmul.mubr.msk.bf16.vlgmr.msra.gmra.mxu1 %vm718_vm3, %v844_v39  ;;  %v1232_v59 = vsel %vm1231_vm7, %v2009_v38, %v2010_v37  ;;  %v1173_v63 = vpack.c.bf16 %v1169_v58, %v1169_v58 }
 0x708   : > { %v1239_v51 = vsel %vm588_vm8, %v1233_v47, 0.0  ;;  %v2018_v52 = vpop.permute.xlu0 %2017  ;;  %1074 = vmatpush1.bf16.msra.mxu1 %v1054_v50  ;;  %1091 = vmatprep.mubr.bf16.mxu1 %v2093_v0  ;;  %v1238_v5 = vsel %vm2332_vm13, %v1232_v59, 0.0  ;;  %v1312_v8 = vpack.c.bf16 %v1308_v1, %v1308_v1  ;;  %v1301_v41 = vsel %vm1300_vm9, %v2014_v28, %v2015_v27 }
 0x709   : > { %v2020_v60 = vunpack.i.h.bf16 %v2018_v52  ;;  %v2019_v61 = vunpack.i.l.bf16 %v2018_v52  ;;  %1877 = vmatprep.subr.msk.bf16.mxu1 %vm722_vm2, %v1174_v53  ;;  %v1243_v36 = vpack.c.bf16 %v1239_v51, %v1239_v51  ;;  %v1179_v7 = vsel %vm722_vm2, %v1173_v63, 0 }
 0x70a   : > { %v1242_v9 = vpack.c.bf16 %v1238_v5, %v1238_v5  ;;  %v1311_v13 = vpack.c.bf16 %v1301_v41, %v1301_v41 }
 0x70b   : > { %v1371_v6 = vsel %vm1369_vm10, %v2020_v60, %v2019_v61  ;;  %v1370_v55 = vsel %vm1369_vm10, %v2019_v61, %v2020_v60 }
 0x70c   : > { %1869 = vmatmul.mubr.msk.bf16.vlgmr.msra.gmra.mxu0 %vm718_vm3, %v1867_v57  ;;  %v1377_v10 = vsel %vm590_vm11, %v1371_v6, 0.0  ;;  %v1248_v11 = vsel %vm722_vm2, %v1242_v9, 0  ;;  %v1376_v15 = vsel %vm2312_vm5, %v1370_v55, 0.0  ;;  %v1317_v40 = vsel %vm722_vm2, %v1311_v13, 0 }
 0x70d   : > { %1130 = vmatpush1.bf16.msra.mxu0 %v1110_v62  ;;  %1147 = vmatprep.mubr.bf16.mxu0 %v2093_v0  ;;  %v1381_v12 = vpack.c.bf16 %v1377_v10, %v1377_v10  ;;  %v1380_v16 = vpack.c.bf16 %v1376_v15, %v1376_v15 }
 0x70e   : > { %1880 = vmatprep.subr.msk.bf16.mxu0 %vm722_vm2, %v1243_v36 }
 0x70f   : > { %1872 = vmatmul.mubr.msk.bf16.vlgmr.msra.gmra.mxu1 %vm718_vm3, %v1870_v4  ;;  %v1386_v44 = vsel %vm722_vm2, %v1380_v16, 0 }
 0x710   : > { %1199 = vmatpush1.bf16.msra.mxu1 %v1179_v7  ;;  %1216 = vmatprep.mubr.bf16.mxu1 %v2093_v0 }
 0x711   : > { %1883 = vmatprep.subr.msk.bf16.mxu1 %vm722_vm2, %v1312_v8 }
 0x714   : > { %1875 = vmatmul.mubr.msk.bf16.vlgmr.msra.gmra.mxu0 %vm718_vm3, %v1873_v45 }
 0x715   : > { %1268 = vmatpush1.bf16.msra.mxu0 %v1248_v11  ;;  %1285 = vmatprep.mubr.bf16.mxu0 %v2093_v0 }
 0x716   : > { %1886 = vmatprep.subr.msk.bf16.mxu0 %vm722_vm2, %v1381_v12 }
 0x717   : > { %1878 = vmatmul.mubr.msk.bf16.vlgmr.msra.gmra.mxu1 %vm718_vm3, %v1876_v14 }
 0x718   : > { %1337 = vmatpush1.bf16.msra.mxu1 %v1317_v40  ;;  %1354 = vmatprep.mubr.bf16.mxu1 %v2093_v0 }
 0x719   : > { %1888 = vmatprep.subr.msk.bf16.mxu1 %vm606_vm0, %v2250_v2  ;;  %v1497_v2 = vld [vmem:[%s2617_s4] sm:$0x1]  ;;  %s2035_s4 = sshll.u32 %s2102_s3, 4  ;;  %s2036_s4 = int_to_ptr.vmem [resolvable:$false] %s2035_s4 }
 0x71c   : > { %1881 = vmatmul.mubr.msk.bf16.vlgmr.msra.gmra.mxu0 %vm718_vm3, %v1879_v17 }
 0x71d   : > { %1406 = vmatpush1.bf16.msra.mxu0 %v1386_v44  ;;  %1423 = vmatprep.mubr.bf16.mxu0 %v2093_v0 }
 0x71f   : > { %1884 = vmatmul.mubr.msk.bf16.vlgmr.msra.gmra.mxu1 %vm718_vm3, %v1882_v18 }
 0x720   : > { %1516 = vmatpush1.bf16.msra.mxu1 %v2253_v3  ;;  %1533 = vmatprep.mubr.bf16.mxu1 %v2093_v0 }
 0x724   : > { %1887 = vmatmul.mubr.msk.bf16.vlgmr.msra.gmra.mxu0 %vm718_vm3, %v1885_v19 }
 0x725   : > { %1650 = vmatprep.mubr.bf16.mxu0 %v2093_v0 }
 0x727   : > { %1889 = vmatmul.mubr.msk.bf16.vlgmr.msra.gmra.mxu1 %vm602_vm1, %v1497_v2 }
 0x728   : > { %1700 = vmatprep.mubr.bf16.mxu1 %v2093_v0 }
 0x7c4   : > { %v907_v20 = vpop.f32.mrf.mxu0 }
 0x7c6   : > { %v909_v21 = vpop.f32.mrf.mxu0 }
 0x7c7   : > { %v957_v23 = vpop.f32.mrf.mxu1 }
 0x7c8   : > { %v911_v22 = vpop.f32.mrf.mxu0  ;;  %v958_v38 = vadd.f32 %v957_v23, %v907_v20 }
 0x7c9   : > { %v959_v3 = vpop.f32.mrf.mxu1 }
 0x7ca   : > { %v912_v24 = vpop.f32.mrf.mxu0  ;;  %v960_v42 = vadd.f32 %v959_v3, %v909_v21 }
 0x7cb   : > { %v961_v25 = vpop.f32.mrf.mxu1 }
 0x7cc   : > { %v1024_v26 = vpop.f32.mrf.mxu0 }
 0x7cd   : > { %v962_v27 = vpop.f32.mrf.mxu1  ;;  %v1031_v43 = vadd.f32 %v1024_v26, %v958_v38 }
 0x7ce   : > { %v1026_v28 = vpop.f32.mrf.mxu0 }
 0x7cf   : > { %v1093_v30 = vpop.f32.mrf.mxu1  ;;  %v1032_v50 = vadd.f32 %v1026_v28, %v960_v42 }
 0x7d0   : > { %v1028_v29 = vpop.f32.mrf.mxu0  ;;  %v1100_v51 = vadd.f32 %v1093_v30, %v1031_v43 }
 0x7d1   : > { %v1095_v32 = vpop.f32.mrf.mxu1 }
 0x7d2   : > { %v1029_v31 = vpop.f32.mrf.mxu0  ;;  %v1101_v54 = vadd.f32 %v1095_v32, %v1032_v50 }
 0x7d3   : > { %v1097_v33 = vpop.f32.mrf.mxu1 }
 0x7d4   : > { %v1149_v34 = vpop.f32.mrf.mxu0 }
 0x7d5   : > { %v1098_v35 = vpop.f32.mrf.mxu1  ;;  %v1156_v56 = vadd.f32 %v1149_v34, %v1100_v51 }
 0x7d6   : > { %v1151_v37 = vpop.f32.mrf.mxu0 }
 0x7d7   : > { %v1218_v39 = vpop.f32.mrf.mxu1  ;;  %v1157_v59 = vadd.f32 %v1151_v37, %v1101_v54 }
 0x7d8   : > { %v1153_v0 = vpop.f32.mrf.mxu0  ;;  %v1225_v60 = vadd.f32 %v1218_v39, %v1156_v56 }
 0x7d9   : > { %v1220_v47 = vpop.f32.mrf.mxu1 }
 0x7da   : > { %v1154_v46 = vpop.f32.mrf.mxu0  ;;  %v1226_v62 = vadd.f32 %v1220_v47, %v1157_v59 }
 0x7db   : > { %v1222_v52 = vpop.f32.mrf.mxu1 }
 0x7dc   : > { %v1287_v53 = vpop.f32.mrf.mxu0 }
 0x7dd   : > { %v1223_v57 = vpop.f32.mrf.mxu1  ;;  %v1294_v63 = vadd.f32 %v1287_v53, %v1225_v60 }
 0x7de   : > { %v1289_v58 = vpop.f32.mrf.mxu0  ;;  %v1469_v57 = vld [vmem:[%s2585_s11] sm:$0x3] }
 0x7df   : > { %v1356_v36 = vpop.f32.mrf.mxu1  ;;  %v1295_v5 = vadd.f32 %v1289_v58, %v1226_v62 }
 0x7e0   : > { %v1291_v61 = vpop.f32.mrf.mxu0  ;;  %v1363_v6 = vadd.f32 %v1356_v36, %v1294_v63 }
 0x7e1   : > { %v1358_v4 = vpop.f32.mrf.mxu1 }
 0x7e2   : > { %v1292_v1 = vpop.f32.mrf.mxu0  ;;  %v1364_v9 = vadd.f32 %v1358_v4, %v1295_v5 }
 0x7e3   : > { %v1360_v7 = vpop.f32.mrf.mxu1 }
 0x7e4   : > { %v1425_v8 = vpop.f32.mrf.mxu0  ;;  %v1476_v7 = vld [vmem:[%s2586_s12] sm:$0x3] }
 0x7e5   : > { %v2476_v10 = vadd.f32 %v1425_v8, %v1363_v6  ;;  %v1361_v45 = vpop.f32.mrf.mxu1 }
 0x7e6   : > { %v1427_v41 = vpop.f32.mrf.mxu0 }
 0x7e7   : > { %v2478_v55 = vadd.f32 %v1427_v41, %v1364_v9  ;;  %v1434_v12 = vsel %vm606_vm0, %v2476_v10, 0.0  ;;  %v2484_v40 = vpop.f32.mrf.mxu1 }
 0x7e8   : > { %v1429_v11 = vpop.f32.mrf.mxu0  ;;  %v1542_v30 = vsel %vm606_vm0, %v2484_v40, 0.0 }
 0x7e9   : > { %v1435_v13 = vsel %vm606_vm0, %v2478_v55, 0.0  ;;  %v2486_v16 = vpop.f32.mrf.mxu1 }
 0x7ea   : > { %v1430_v14 = vpop.f32.mrf.mxu0  ;;  %v1436_v15 = vadd.f32 %v1435_v13, %v1434_v12  ;;  %v1543_v31 = vsel %vm606_vm0, %v2486_v16, 0.0 }
 0x7eb   : > { %v1539_v17 = vpop.f32.mrf.mxu1  ;;  %v1544_v33 = vadd.f32 %v1543_v31, %v1542_v30  ;;  %v1603_v30 = vld [vmem:[%s2587_s13] sm:$0x3] }
 0x7ec   : > { %1437 = vadd.xlane.f32.xlu1 %v1436_v15 }
 0x7ed   : > { %v1540_v44 = vpop.f32.mrf.mxu1 }
 0x875   : > { %v1438_v18 = vpop.xlane.xlu1 %1437 }
 0x876   : > { %v1439_v19 = vrot.slane %v1438_v18, 4 }
 0x878   : > { %v1440_v2 = vadd.f32 %v1439_v19, %v1438_v18 }
 0x87a   : > { %v1441_v20 = vrot.slane %v1440_v2, 2 }
 0x87c   : > { %v1442_v21 = vadd.f32 %v1441_v20, %v1440_v2 }
 0x87e   : > { %v1443_v22 = vrot.slane %v1442_v21, 1 }
 0x880   : > { %v1444_v23 = vadd.f32 %v1443_v22, %v1442_v21 }
 0x882   : > { %1913 = vpush %v1444_v23 }
 0x8b3   : > { %s1914_s23 = spop %1913 }
 0x8b4   : > { %s1448_s29 = smul.f32 0.001953125, %s1914_s23 }
 0x8b6   : > { %v1449_v24 = vstv %s1448_s29 }
 0x8b7   : > { %v1450_v3 = vsub.f32 %v2476_v10, %v1449_v24  ;;  %v1451_v25 = vsub.f32 %v2478_v55, %v1449_v24 }
 0x8b9   : > { %v1452_v26 = vmul.f32 %v1450_v3, %v1450_v3  ;;  %v1453_v27 = vmul.f32 %v1451_v25, %v1451_v25 }
 0x8bb   : > { %v1454_v28 = vsel %vm606_vm0, %v1452_v26, 0.0  ;;  %v1455_v29 = vsel %vm606_vm0, %v1453_v27, 0.0  ;;  %v1584_v27 = vld [vmem:[%s2580_s6] sm:$0x3] }
 0x8bc   : > { %v1456_v32 = vadd.f32 %v1455_v29, %v1454_v28 }
 0x8be   : > { %1457 = vadd.xlane.f32.xlu0 %v1456_v32 }
 0x8c2   : > { %1545 = vadd.xlane.f32.xlu0 %v1544_v33 }
 0x947   : > { %v1458_v34 = vpop.xlane.xlu0 %1457 }
 0x948   : > { %v1459_v35 = vrot.slane %v1458_v34, 4 }
 0x94a   : > { %v1460_v37 = vadd.f32 %v1459_v35, %v1458_v34 }
 0x94b   : > { %v1546_v43 = vpop.xlane.xlu0 %1545 }
 0x94c   : > { %v1461_v38 = vrot.slane %v1460_v37, 2  ;;  %v1547_v46 = vrot.slane %v1546_v43, 4 }
 0x94e   : > { %v1462_v0 = vadd.f32 %v1461_v38, %v1460_v37  ;;  %v1548_v47 = vadd.f32 %v1547_v46, %v1546_v43  ;;  %v1606_v46 = vld [vmem:[%s2588_s14] sm:$0x3] }
 0x950   : > { %v1463_v39 = vrot.slane %v1462_v0, 1  ;;  %v1549_v51 = vrot.slane %v1548_v47, 2 }
 0x952   : > { %v1464_v42 = vadd.f32 %v1463_v39, %v1462_v0  ;;  %v1550_v52 = vadd.f32 %v1549_v51, %v1548_v47 }
 0x954   : > { %1915 = vpush %v1464_v42  ;;  %v1551_v53 = vrot.slane %v1550_v52, 1 }
 0x956   : > { %v1552_v56 = vadd.f32 %v1551_v53, %v1550_v52 }
 0x985   : > { %s1916_s30 = spop %1915 }
 0x986   : > { %s1468_s18 = smul.f32 0.001953125, %s1916_s30 }
 0x988   : > { %s1470_s26 = sadd.f32 1e-05, %s1468_s18 }
 0x98a   : > { %v1471_v50 = vstv %s1470_s26 }
 0x98b   : > { %2025 = vrsqrt.f32 %v1471_v50 }
 0x998   : > { %v2026_v54 = vpop.eup %2025 }
 0x999   : > { %1917 = vpush %v2026_v54 }
 0x99a   : > { %1919 = vpush %v1552_v56 }
 0x9ca   : > { %s1918_s21 = spop %1917 }
 0x9cb   : > { %v1474_v58 = vstv %s1918_s21  ;;  %s1920_s22 = spop %1919 }
 0x9cc   : > { %v1475_v59 = vmul.f32 %v1474_v58, %v1469_v57  ;;  %s1556_s23 = smul.f32 0.001953125, %s1920_s22 }
 0x9ce   : > { %v1557_v60 = vstv %s1556_s23  ;;  %1481 = vperm.xlu0 %1980, %v1475_v59   ;;  %v1477_v6 = vmul.f32 %v1475_v59, %v1449_v24 }
 0x9cf   : > { %v1558_v61 = vsub.f32 %v2484_v40, %v1557_v60  ;;  %v1559_v36 = vsub.f32 %v2486_v16, %v1557_v60 }
 0x9d0   : > { %v1478_v8 = vsub.f32 %v1476_v7, %v1477_v6 }
 0x9d1   : > { %v1560_v62 = vmul.f32 %v1558_v61, %v1558_v61  ;;  %v1561_v63 = vmul.f32 %v1559_v36, %v1559_v36 }
 0x9d3   : > { %v1562_v1 = vsel %vm606_vm0, %v1560_v62, 0.0  ;;  %v1563_v4 = vsel %vm606_vm0, %v1561_v63, 0.0  ;;  %vm1709_vm0 = vcmask 1043456  }
 0x9d4   : > { %v1564_v5 = vadd.f32 %v1563_v4, %v1562_v1 }
 0x9d6   : > { %1565 = vadd.xlane.f32.xlu1 %v1564_v5 }
 0x9e7   : > { %1488 = vperm.xlu1 %1979, %v1478_v8  }
 0xa49   : > { %v1482_v9 = vpop.permute.xlu0 %1481 }
 0xa4a   : > { %v1484_v11 = vmul.f32 %v1482_v9, %v2476_v10  ;;  %v1485_v12 = vmul.f32 %v1482_v9, %v2478_v55 }
 0xa5f   : > { %v1566_v45 = vpop.xlane.xlu1 %1565 }
 0xa60   : > { %v1567_v41 = vrot.slane %v1566_v45, 4 }
 0xa62   : > { %v1568_v13 = vadd.f32 %v1567_v41, %v1566_v45 }
 0xa63   : > { %v1489_v14 = vpop.permute.xlu1 %1488 }
 0xa64   : > { %v1569_v15 = vrot.slane %v1568_v13, 2  ;;  %v1491_v17 = vadd.f32 %v1489_v14, %v1484_v11  ;;  %v1492_v44 = vadd.f32 %v1489_v14, %v1485_v12 }
 0xa66   : > { %v1493_v18 = vmax.f32 %v1491_v17, 0.0  ;;  %v1494_v19 = vmax.f32 %v1492_v44, 0.0  ;;  %v1570_v2 = vadd.f32 %v1569_v15, %v1568_v13 }
 0xa68   : > { %v1495_v20 = vadd.f32 %v1493_v18, %v2273_v48  ;;  %v1496_v21 = vadd.f32 %v1494_v19, %v2275_v49  ;;  %v1571_v22 = vrot.slane %v1570_v2, 1  ;;  %v1577_v48 = vld [vmem:[%s2579_s5] sm:$0x3] }
 0xa6a   : > { %v1604_v23 = vpack.c.bf16 %v1495_v20, %v1495_v20  ;;  %v1605_v24 = vpack.c.bf16 %v1496_v21, %v1496_v21  ;;  %v1572_v3 = vadd.f32 %v1571_v22, %v1570_v2  ;;  %v1745_v21 = vld [vmem:[%s2589_s15] sm:$0xf] }
 0xa6c   : > { %1921 = vpush %v1572_v3  ;;  %1892 = vmatprep.subr.msk.bf16.mxu1 %vm722_vm2, %v1605_v24  ;;  %v1663_v10 = vsel %vm722_vm2, %v1604_v23, 0  ;;  %v1752_v24 = vld [vmem:[%s2590_s16] sm:$0xf] }
 0xa6d   : > { %1683 = vmatpush1.bf16.msra.mxu1 %v1663_v10 }
 0xa70   : > { %1893 = vmatmul.mubr.msk.bf16.vlgmr.msra.gmra.mxu1 %vm718_vm3, %v1603_v30 }
 0xa9d   : > { %s1922_s18 = spop %1921 }
 0xa9e   : > { %s1576_s26 = smul.f32 0.001953125, %s1922_s18 }
 0xaa0   : > { %s1578_s0 = sadd.f32 1e-05, %s1576_s26 }
 0xaa2   : > { %v1579_v55 = vstv %s1578_s0 }
 0xaa3   : > { %2027 = vrsqrt.f32 %v1579_v55 }
 0xab0   : > { %v2028_v25 = vpop.eup %2027 }
 0xab1   : > { %1923 = vpush %v2028_v25 }
 0xae2   : > { %s1924_s22 = spop %1923 }
 0xae3   : > { %v1582_v49 = vstv %s1924_s22 }
 0xae4   : > { %v1583_v26 = vmul.f32 %v1582_v49, %v1577_v48 }
 0xae6   : > { %v1585_v28 = vmul.f32 %v1583_v26, %v1557_v60  ;;  %1589 = vperm.xlu1 %1979, %v1583_v26  }
 0xae8   : > { %v1586_v29 = vsub.f32 %v1584_v27, %v1585_v28 }
 0xaea   : > { %1596 = vperm.xlu0 %1980, %v1586_v29  }
 0xb61   : > { %v1590_v31 = vpop.permute.xlu1 %1589 }
 0xb62   : > { %v1592_v32 = vmul.f32 %v1590_v31, %v2484_v40  ;;  %v1593_v33 = vmul.f32 %v1590_v31, %v2486_v16  ;;  %v1702_v40 = vpop.f32.mrf.mxu1 }
 0xb64   : > { %v1704_v16 = vpop.f32.mrf.mxu1 }
 0xb65   : > { %v1597_v34 = vpop.permute.xlu0 %1596 }
 0xb66   : > { %v1599_v35 = vadd.f32 %v1597_v34, %v1592_v32  ;;  %v1600_v37 = vadd.f32 %v1597_v34, %v1593_v33  ;;  %v1706_v47 = vpop.f32.mrf.mxu1 }
 0xb68   : > { %v1601_v38 = vmax.f32 %v1599_v35, 0.0  ;;  %v1602_v0 = vmax.f32 %v1600_v37, 0.0  ;;  %v1707_v50 = vpop.f32.mrf.mxu1 }
 0xb6a   : > { %v1607_v39 = vpack.c.bf16 %v1601_v38, %v1601_v38  ;;  %v1608_v42 = vpack.c.bf16 %v1602_v0, %v1602_v0 }
 0xb6c   : > { %1890 = vmatprep.subr.msk.bf16.mxu0 %vm722_vm2, %v1608_v42  ;;  %v1613_v43 = vsel %vm722_vm2, %v1607_v39, 0 }
 0xb6d   : > { %1633 = vmatpush1.bf16.msra.mxu0 %v1613_v43 }
 0xb70   : > { %1891 = vmatmul.mubr.msk.bf16.vlgmr.msra.gmra.mxu0 %vm718_vm3, %v1606_v46 }
 0xc30   : > { %v1652_v51 = vpop.f32.mrf.mxu0 }
 0xc31   : > { %v1703_v52 = vadd.f32 %v1702_v40, %v1652_v51 }
 0xc32   : > { %v1654_v53 = vpop.f32.mrf.mxu0 }
 0xc33   : > { %v1705_v54 = vadd.f32 %v1704_v16, %v1654_v53  ;;  %v1710_v57 = vsel %vm1709_vm0, %v1703_v52, 0.0 }
 0xc34   : > { %v1656_v56 = vpop.f32.mrf.mxu0 }
 0xc35   : > { %v1711_v58 = vsel %vm1709_vm0, %v1705_v54, 0.0 }
 0xc36   : > { %v1657_v59 = vpop.f32.mrf.mxu0  ;;  %v1712_v60 = vadd.f32 %v1711_v58, %v1710_v57 }
 0xc38   : > { %1713 = vadd.xlane.f32.xlu1 %v1712_v60 }
 0xcc1   : > { %v1714_v61 = vpop.xlane.xlu1 %1713 }
 0xcc2   : > { %v1715_v36 = vrot.slane %v1714_v61, 4 }
 0xcc4   : > { %v1716_v62 = vadd.f32 %v1715_v36, %v1714_v61 }
 0xcc6   : > { %v1717_v63 = vrot.slane %v1716_v62, 2 }
 0xcc8   : > { %v1718_v1 = vadd.f32 %v1717_v63, %v1716_v62 }
 0xcca   : > { %v1719_v4 = vrot.slane %v1718_v1, 1 }
 0xccc   : > { %v1720_v5 = vadd.f32 %v1719_v4, %v1718_v1 }
 0xcce   : > { %1925 = vpush %v1720_v5 }
 0xcff   : > { %s1926_s19 = spop %1925 }
 0xd00   : > { %s1724_s21 = smul.f32 0.0009765625, %s1926_s19 }
 0xd02   : > { %v1725_v6 = vstv %s1724_s21  ;;  %s539_s21 = sand.u32 1, %s2083_s25  }
 0xd03   : > { %v1726_v7 = vsub.f32 %v1703_v52, %v1725_v6  ;;  %v1727_v8 = vsub.f32 %v1705_v54, %v1725_v6  ;;  %s1777_s19 = scalar_lea.sflag [#allocation3], %s539_s21 }
 0xd05   : > { %v1728_v9 = vmul.f32 %v1726_v7, %v1726_v7  ;;  %v1729_v45 = vmul.f32 %v1727_v8, %v1727_v8 }
 0xd07   : > { %v1730_v41 = vsel %vm1709_vm0, %v1728_v9, 0.0  ;;  %v1731_v11 = vsel %vm1709_vm0, %v1729_v45, 0.0 }
 0xd08   : > { %v1732_v12 = vadd.f32 %v1731_v11, %v1730_v41 }
 0xd0a   : > { %1733 = vadd.xlane.f32.xlu0 %v1732_v12 }
 0xd93   : > { %v1734_v13 = vpop.xlane.xlu0 %1733 }
 0xd94   : > { %v1735_v14 = vrot.slane %v1734_v13, 4 }
 0xd96   : > { %v1736_v15 = vadd.f32 %v1735_v14, %v1734_v13 }
 0xd98   : > { %v1737_v17 = vrot.slane %v1736_v15, 2 }
 0xd9a   : > { %v1738_v44 = vadd.f32 %v1737_v17, %v1736_v15 }
 0xd9c   : > { %v1739_v18 = vrot.slane %v1738_v44, 1 }
 0xd9e   : > { %v1740_v19 = vadd.f32 %v1739_v18, %v1738_v44 }
 0xda0   : > { %1927 = vpush %v1740_v19 }
 0xdd1   : > { %s1928_s22 = spop %1927 }
 0xdd2   : > { %s1744_s23 = smul.f32 0.0009765625, %s1928_s22  ;;  %s1854_s22 = sshll.u32 %s539_s21, 3 }
 0xdd4   : > { %s1746_s29 = sadd.f32 1e-05, %s1744_s23  ;;  %s1900_s23 = sshll.u32 %s2214_s28, 7 }
 0xdd5   : > { %s1789_s0 = scalar_lea.hbm %s2591_s17, %s1900_s23  ;;  %s2037_s28 = scalar_lea.vmem %s2036_s4, 256 }
 0xdd6   : > { %v1747_v2 = vstv %s1746_s29  ;;  %s541_s29 = scalar_lea.vmem [#allocation2], %s1854_s22 }
 0xdd7   : > { %2029 = vrsqrt.f32 %v1747_v2  ;;  %s1791_s30 = sshll.u32 %s541_s29, 4  ;;  %s1792_s30 = int_to_ptr.vmem [resolvable:$true] %s1791_s30 }
 0xdd8   : > { %s2031_s2 = scalar_lea.vmem %s1792_s30, 128  ;;  %p2038_p0 = scmp.lt.s32.totalorder %s1792_s30, %s2036_s4 }
 0xdd9   : > { %p2032_p11 = scmp.ne.s32.totalorder %s1792_s30, %s2031_s2  ;;  %p2039_p1 = scmp.lt.s32.totalorder %s2037_s28, %s2031_s2 }
 0xddb   : > { %p2033_p12 = pnand %p2032_p11, %p2231_p5  ;;  %p2040_p2 = por %p2039_p1, %p2038_p0 }
 0xddd   : > { %p2034_p13 = pneg %p2033_p12 }
 0xddf   : > { %p2041_p3 = pnand %p2040_p2, %p2034_p13 }
 0xde4   : > { %v2030_v20 = vpop.eup %2029 }
 0xde5   : > { %1929 = vpush %v2030_v20 }
 0xe16   : > { %s1930_s26 = spop %1929 }
 0xe17   : > { %v1750_v22 = vstv %s1930_s26 }
 0xe18   : > { %v1751_v23 = vmul.f32 %v1750_v22, %v1745_v21 }
 0xe1a   : > { %v1753_v3 = vmul.f32 %v1751_v23, %v1725_v6  ;;  %1757 = vperm.xlu0 %1980, %v1751_v23  }
 0xe1c   : > { %v1754_v10 = vsub.f32 %v1752_v24, %v1753_v3 }
 0xe1e   : > { %1764 = vperm.xlu1 %1979, %v1754_v10  }
 0xe95   : > { %v1758_v55 = vpop.permute.xlu0 %1757 }
 0xe96   : > { %v1760_v25 = vmul.f32 %v1758_v55, %v1703_v52  ;;  %v1761_v48 = vmul.f32 %v1758_v55, %v1705_v54 }
 0xe99   : > { %v1765_v49 = vpop.permute.xlu1 %1764 }
 0xe9a   : > { %v1767_v26 = vadd.f32 %v1765_v49, %v1760_v25  ;;  %v1768_v27 = vadd.f32 %v1765_v49, %v1761_v48 }
 0xe9c   : > { %v1769_v28 = vmax.f32 %v1767_v26, 0.0  ;;  %v1770_v29 = vmax.f32 %v1768_v27, 0.0 }
 0xe9e   : > { %v1773_v30 = vcombine.low %v1769_v28, %v1770_v29 }
 0xea0   : > { %1775 = vst [vmem:[%s541_s29] sm:$0xff] %v1773_v30 }
 0xea1   : > { %2044 = shalt.err (!%p2041_p3)
}
 0xea2   : > { %s2045_s22 = scalar_lea.hbm %s1789_s0, 128  ;;  %s2049_s29 = scalar_lea.hbm %s2591_s17, 256 }
 0xea3   : > { %p2046_p4 = scmp.ne.s32.totalorder %s1789_s0, %s2045_s22  ;;  %p2050_p9 = scmp.lt.s32.totalorder %s1789_s0, %s2591_s17 }
 0xea4   : > { %p2051_p10 = scmp.lt.s32.totalorder %s2049_s29, %s2045_s22 }
 0xea5   : > { %p2047_p7 = pnand %p2046_p4, %p2231_p5 }
 0xea6   : > { %p2052_p11 = por %p2051_p10, %p2050_p9 }
 0xea7   : > { %p2048_p8 = pneg %p2047_p7 }
 0xea9   : > { %p2053_p12 = pnand %p2052_p11, %p2048_p8 }
 0xeab   : > { %2056 = shalt.err (!%p2053_p12)
}
 0xeac   : > { %1931 = dma.vmem_to_hbm [thread:$0]  (%p2231_p5), %s1792_s30, 128, %s1789_s0, %s1777_s19  }
 0xead PF: > { %p1937_p13 = scmp.ge.s32.totalorder %s2091_s27, 2  ;;  %s1803_s2 = sand.u32 1, %s2079_s24  }
 0xeae   : > { %s1804_s3 = scalar_lea.sflag [#allocation3], %s1803_s2 }
 0xeaf   : > { %p1934_p0 = pnand %p1937_p13, %p2235_p6 }
 0xeb1   : > { %p1935_p1 = pneg %p1934_p0 }
 0xeb3   : > { %2074 = dma.done.wait (%p1935_p1), %s1804_s3, 128  }
 0xeb4   : > { %2076 = vsyncadd (%p1935_p1), %s1804_s3, 4294967168  ;;  %s2618_s27 = sld [smem:[#allocation6_spill]]  ;;  %s2621_s24 = smov %s2083_s25 }
 0xeb5   : > { %s2619_s4 = sld [smem:[#allocation5_spill]] }
 0xeb6   : > { %s2620_s26 = sld [smem:[#allocation7_spill]] }
 0xeba   : > { %p27_p2 = scmp.ge.s32.totalorder %s2618_s27, 4  }
 0xebb   : > { %s2622_s25 = smov %s2619_s4 }
 0xebc   :  { %29 = sbr.rel (!%p27_p2) target bundleno = 9 (0x9), region = 131 }
 0xec1   :  { %1809 = vsyncpa [#allocation3], 1 }
 0xec2   :  { %1811 = vsyncpa [#allocation3 + $0x1], 1 }

</bundles_post_ra>
